<compile_context>
chip_gen: v7x
topology: tpu7x:2x2x1
jax: 0.10.0
libtpu: 0.0.40
codegen_flags: <defaults>
</compile_context>

<pallas_src>
import functools
import math

import jax
import jax.numpy as jnp
from jax.experimental import pallas as pl
from jax.experimental.pallas import tpu as pltpu


# ----------------------------------------------------------------------------
# Fused BERT encoder-layer kernel (whole batch, grid=())
# ----------------------------------------------------------------------------
def _encoder_layer_kernel(x_ref, mask_ref, ln0g_ref, ln0b_ref,
                          wqkv_ref, bqkv_ref, wo_ref, bo_ref,
                          ln1g_ref, ln1b_ref,
                          w1_ref, b1_ref, w2_ref, b2_ref,
                          ln2g_ref, ln2b_ref,
                          o_ref, *, batch, seq, num_heads, fuse_input_ln, eps):
    """One full BERT encoder layer for the whole (B*S, H) residual stream."""
    H = x_ref.shape[-1]
    dh = H // num_heads

    xin = x_ref[...].astype(jnp.float32)                       # (B*S, H)

    if fuse_input_ln:
        # Embedding-sum LayerNorm fused into the first layer's prologue.
        mean = jnp.mean(xin, axis=-1, keepdims=True)
        var = jnp.mean((xin - mean) ** 2, axis=-1, keepdims=True)
        x32 = (xin - mean) * jax.lax.rsqrt(var + eps)
        x32 = (x32 * ln0g_ref[...].astype(jnp.float32)
               + ln0b_ref[...].astype(jnp.float32))
    else:
        x32 = xin

    x_bf = x32.astype(jnp.bfloat16)                             # MXU input

    # ---- fused QKV projection (1/sqrt(dh) already folded into Q weights) ----
    qkv = jnp.dot(x_bf, wqkv_ref[...], preferred_element_type=jnp.float32)
    qkv = qkv + bqkv_ref[...].astype(jnp.float32)               # (B*S, 3H) f32
    qkv_bf = qkv.astype(jnp.bfloat16)                           # single cast

    mask = mask_ref[...].astype(jnp.float32)                    # (B, S) additive

    # ---- multi-head attention ----
    # Per-head contexts are collected and concatenated into one lane-dense
    # (B*S, H) bf16 tensor; the output projection is a single K=H matmul.
    ctx_rows = []
    for b in range(batch):
        r0 = b * seq
        # Broadcast the mask once per sequence (hoisted out of the head loop).
        mask_b = jnp.broadcast_to(mask[b:b + 1, :], (seq, seq))
        head_ctx = []
        for h in range(num_heads):
            c0 = h * dh
            qh = qkv_bf[r0:r0 + seq, c0:c0 + dh]                        # (S, dh)
            kh = qkv_bf[r0:r0 + seq, H + c0:H + c0 + dh]                # (S, dh)
            vh = qkv_bf[r0:r0 + seq, 2 * H + c0:2 * H + c0 + dh]        # (S, dh)
            # Contract last dims directly (q . k) -> no explicit K transpose.
            s = jax.lax.dot_general(qh, kh, (((1,), (1,)), ((), ())),
                                    preferred_element_type=jnp.float32)  # (S, S)
            s = s + mask_b
            s = s - jnp.max(s, axis=-1, keepdims=True)
            p = jnp.exp(s)
            l = jnp.sum(p, axis=-1, keepdims=True)                       # (S, 1)
            ctx_h = jnp.dot(p.astype(jnp.bfloat16), vh,
                            preferred_element_type=jnp.float32)          # (S, dh)
            # Deferred softmax normalization: S*dh multiplies instead of S*S;
            # reciprocal runs on the EUP slot.
            head_ctx.append(ctx_h * pl.reciprocal(l, approx=True))
        ctx_rows.append(jnp.concatenate(head_ctx, axis=-1))              # (S, H)
    ctx = jnp.concatenate(ctx_rows, axis=0).astype(jnp.bfloat16)         # (B*S, H)

    # ---- single output projection (K = H, fills the MXU) ----
    attn_out = jnp.dot(ctx, wo_ref[...], preferred_element_type=jnp.float32)
    attn_out = attn_out + bo_ref[...].astype(jnp.float32)

    # ---- residual + LayerNorm 1 (f32) ----
    y = attn_out + x32
    mean = jnp.mean(y, axis=-1, keepdims=True)
    var = jnp.mean((y - mean) ** 2, axis=-1, keepdims=True)
    y = (y - mean) * jax.lax.rsqrt(var + eps)
    y = y * ln1g_ref[...].astype(jnp.float32) + ln1b_ref[...].astype(jnp.float32)

    # ---- feed-forward (GELU) ----
    h1 = jnp.dot(y.astype(jnp.bfloat16), w1_ref[...],
                 preferred_element_type=jnp.float32) + b1_ref[...].astype(jnp.float32)
    # TODO(synk): BERT's reference GELU is erf-based; tanh approximation used
    # here for guaranteed Mosaic lowering (difference < 1e-3 relative).
    c = math.sqrt(2.0 / math.pi)
    h1 = 0.5 * h1 * (1.0 + jnp.tanh(c * (h1 + 0.044715 * h1 * h1 * h1)))
    h2 = jnp.dot(h1.astype(jnp.bfloat16), w2_ref[...],
                 preferred_element_type=jnp.float32) + b2_ref[...].astype(jnp.float32)

    # ---- residual + LayerNorm 2 (f32) ----
    z = h2 + y
    mean = jnp.mean(z, axis=-1, keepdims=True)
    var = jnp.mean((z - mean) ** 2, axis=-1, keepdims=True)
    z = (z - mean) * jax.lax.rsqrt(var + eps)
    z = z * ln2g_ref[...].astype(jnp.float32) + ln2b_ref[...].astype(jnp.float32)

    o_ref[...] = z.astype(o_ref.dtype)


# ----------------------------------------------------------------------------
# Pallas wrapper (one grid-less pallas_call per encoder layer)
# ----------------------------------------------------------------------------
def encoder_layer(x2d, add_mask, p, ln0_g, ln0_b, *,
                  batch, seq, num_heads, fuse_input_ln, eps=1e-12):
    """x2d: (B*S, H) residual stream; add_mask: (B, S) f32 additive mask."""
    BS, H = x2d.shape
    kern = functools.partial(
        _encoder_layer_kernel, batch=batch, seq=seq, num_heads=num_heads,
        fuse_input_ln=fuse_input_ln, eps=eps)
    return pl.pallas_call(
        kern,
        out_shape=jax.ShapeDtypeStruct((BS, H), jnp.bfloat16),
        # grid=() : single step, whole batch, everything resident in VMEM at
        # these demo shapes (no double-buffered weight copies, no per-step
        # loop overhead).  See scaling note at top for real BERT shapes.
        compiler_params=pltpu.CompilerParams(
            vmem_limit_bytes=32 * 1024 * 1024),
    )(x2d, add_mask, ln0_g, ln0_b,
      p["wqkv"], p["bqkv"], p["wo"], p["bo"],
      p["ln1_g"], p["ln1_b"], p["w1"], p["b1"], p["w2"], p["b2"],
      p["ln2_g"], p["ln2_b"])


# ----------------------------------------------------------------------------
# Synthetic BERT parameters (deterministic init — no checkpoint load)
# ----------------------------------------------------------------------------
CFG = dict(vocab=100, hidden=32, heads=4, intermediate=64,
           layers=2, max_pos=16, type_vocab=2)


def init_params(key, cfg):
    H, I = cfg["hidden"], cfg["intermediate"]
    dh = H // cfg["heads"]
    scale = 1.0 / math.sqrt(dh)
    keys = iter(jax.random.split(key, 256))

    def w(shape):
        return (0.02 * jax.random.normal(next(keys), shape)).astype(jnp.float32)

    zeros = lambda n: jnp.zeros((n,), jnp.float32)
    ones = lambda n: jnp.ones((n,), jnp.float32)

    params = {
        "word_emb": w((cfg["vocab"], H)),
        "pos_emb": w((cfg["max_pos"], H)),
        "type_emb": w((cfg["type_vocab"], H)),
        "emb_ln_g": ones(H).reshape(1, H), "emb_ln_b": zeros(H).reshape(1, H),
        "layers": [],
    }
    for _ in range(cfg["layers"]):
        wq, wk, wv, wo = w((H, H)), w((H, H)), w((H, H)), w((H, H))
        bq, bk, bv = zeros(H), zeros(H), zeros(H)
        # Pack once at init: Q/K/V concatenated into (H, 3H) bf16 with the
        # 1/sqrt(dh) attention scale folded into the Q weight + bias (zero
        # runtime cost, deletes the per-head score multiply).
        params["layers"].append({
            "wqkv": jnp.concatenate([wq * scale, wk, wv], axis=1).astype(jnp.bfloat16),
            "bqkv": jnp.concatenate([bq * scale, bk, bv]).reshape(1, 3 * H),
            "wo": wo.astype(jnp.bfloat16), "bo": zeros(H).reshape(1, H),
            "ln1_g": ones(H).reshape(1, H), "ln1_b": zeros(H).reshape(1, H),
            "w1": w((H, I)).astype(jnp.bfloat16), "b1": zeros(I).reshape(1, I),
            "w2": w((I, H)).astype(jnp.bfloat16), "b2": zeros(H).reshape(1, H),
            "ln2_g": ones(H).reshape(1, H), "ln2_b": zeros(H).reshape(1, H),
        })
    return params


# ----------------------------------------------------------------------------
# TextNet.forward : BertModel(tokens, token_type_ids, attention_mask)[0][:, 0, :]
# ----------------------------------------------------------------------------
def textnet_forward(params, tokens, segments, input_masks, cfg=CFG):
    B, S = tokens.shape
    H, nh = cfg["hidden"], cfg["heads"]

    # --- embeddings (gathers = JAX glue) ---
    we = params["word_emb"][tokens]                       # (B,S,H)
    pe = params["pos_emb"][jnp.arange(S)]                 # (S,H)
    te = params["type_emb"][segments]                     # (B,S,H)
    x = (we + pe[None, :, :] + te).reshape(B * S, H)      # (B*S,H) f32
    # Embedding LayerNorm is fused into layer 0; dropout is identity at inference.

    # --- additive attention mask, applied per sequence inside the kernel ---
    add_mask = (1.0 - input_masks.astype(jnp.float32)) * -10000.0        # (B, S)

    for li, lp in enumerate(params["layers"]):
        x = encoder_layer(x, add_mask, lp,
                          params["emb_ln_g"], params["emb_ln_b"],
                          batch=B, seq=S, num_heads=nh,
                          fuse_input_ln=(li == 0))        # one pallas_call / layer

    cls = x.reshape(B, S, H)[:, 0, :]                     # [CLS] embeddings
    return cls.astype(jnp.float32)                        # (B, H)


# ----------------------------------------------------------------------------
if __name__ == "__main__":
    key = jax.random.PRNGKey(0)
    k_params, k_tok = jax.random.split(key)

    params = init_params(k_params, CFG)

    B, S = 2, 8
    tokens = jax.random.randint(k_tok, (B, S), 0, CFG["vocab"], dtype=jnp.int32)
    segments = jnp.zeros((B, S), dtype=jnp.int32)
    input_masks = jnp.array([[1, 1, 1, 1, 1, 1, 1, 1],
                             [1, 1, 1, 1, 1, 1, 0, 0]], dtype=jnp.int32)

    fwd = jax.jit(textnet_forward)
    text_embeddings = fwd(params, tokens, segments, input_masks)
    jax.block_until_ready(text_embeddings)
    assert text_embeddings.shape == (B, CFG["hidden"])
    assert bool(jnp.all(jnp.isfinite(text_embeddings)))
    print("KERNEL_OK")
</pallas_src>

<mosaic_0001>
module attributes {stable_mosaic.version = 11 : i64} {
  func.func @_encoder_layer_kernel(%arg0: memref<16x32xf32, #tpu.memory_space<vmem>>, %arg1: memref<2x8xf32, #tpu.memory_space<vmem>>, %arg2: memref<1x32xf32, #tpu.memory_space<vmem>>, %arg3: memref<1x32xf32, #tpu.memory_space<vmem>>, %arg4: memref<32x96xbf16, #tpu.memory_space<vmem>>, %arg5: memref<1x96xf32, #tpu.memory_space<vmem>>, %arg6: memref<32x32xbf16, #tpu.memory_space<vmem>>, %arg7: memref<1x32xf32, #tpu.memory_space<vmem>>, %arg8: memref<1x32xf32, #tpu.memory_space<vmem>>, %arg9: memref<1x32xf32, #tpu.memory_space<vmem>>, %arg10: memref<32x64xbf16, #tpu.memory_space<vmem>>, %arg11: memref<1x64xf32, #tpu.memory_space<vmem>>, %arg12: memref<64x32xbf16, #tpu.memory_space<vmem>>, %arg13: memref<1x32xf32, #tpu.memory_space<vmem>>, %arg14: memref<1x32xf32, #tpu.memory_space<vmem>>, %arg15: memref<1x32xf32, #tpu.memory_space<vmem>>, %arg16: memref<16x32xbf16, #tpu.memory_space<vmem>>) attributes {dimension_semantics = [], scalar_prefetch = 0 : i64, scratch_operands = 0 : i64, tpu.core_type = #tpu.core_type<tc>} {
    %c0 = arith.constant 0 : index
    %c0_0 = arith.constant 0 : index
    %0 = vector.load %arg0[%c0, %c0_0] : memref<16x32xf32, #tpu.memory_space<vmem>>, vector<16x32xf32>
    %cst = arith.constant dense<0.000000e+00> : vector<16xf32>
    %1 = vector.multi_reduction <add>, %0, %cst [1] : vector<16x32xf32> to vector<16xf32>
    %2 = vector.shape_cast %1 : vector<16xf32> to vector<16x1xf32>
    %cst_1 = arith.constant 3.200000e+01 : f32
    %3 = vector.broadcast %cst_1 : f32 to vector<16x1xf32>
    %4 = arith.divf %2, %3 : vector<16x1xf32>
    %5 = vector.broadcast %4 : vector<16x1xf32> to vector<16x32xf32>
    %6 = arith.subf %0, %5 : vector<16x32xf32>
    %7 = arith.mulf %6, %6 : vector<16x32xf32>
    %cst_2 = arith.constant dense<0.000000e+00> : vector<16xf32>
    %8 = vector.multi_reduction <add>, %7, %cst_2 [1] : vector<16x32xf32> to vector<16xf32>
    %9 = vector.shape_cast %8 : vector<16xf32> to vector<16x1xf32>
    %cst_3 = arith.constant 3.200000e+01 : f32
    %10 = vector.broadcast %cst_3 : f32 to vector<16x1xf32>
    %11 = arith.divf %9, %10 : vector<16x1xf32>
    %12 = vector.broadcast %4 : vector<16x1xf32> to vector<16x32xf32>
    %13 = arith.subf %0, %12 : vector<16x32xf32>
    %cst_4 = arith.constant 9.99999996E-13 : f32
    %14 = vector.broadcast %cst_4 : f32 to vector<16x1xf32>
    %15 = arith.addf %11, %14 : vector<16x1xf32>
    %16 = math.rsqrt %15 : vector<16x1xf32>
    %17 = vector.broadcast %16 : vector<16x1xf32> to vector<16x32xf32>
    %18 = arith.mulf %13, %17 : vector<16x32xf32>
    %c0_5 = arith.constant 0 : index
    %c0_6 = arith.constant 0 : index
    %19 = vector.load %arg2[%c0_5, %c0_6] : memref<1x32xf32, #tpu.memory_space<vmem>>, vector<1x32xf32>
    %20 = vector.broadcast %19 : vector<1x32xf32> to vector<16x32xf32>
    %21 = arith.mulf %18, %20 : vector<16x32xf32>
    %c0_7 = arith.constant 0 : index
    %c0_8 = arith.constant 0 : index
    %22 = vector.load %arg3[%c0_7, %c0_8] : memref<1x32xf32, #tpu.memory_space<vmem>>, vector<1x32xf32>
    %23 = vector.broadcast %22 : vector<1x32xf32> to vector<16x32xf32>
    %24 = arith.addf %21, %23 : vector<16x32xf32>
    %25 = arith.truncf %24 : vector<16x32xf32> to vector<16x32xbf16>
    %c0_9 = arith.constant 0 : index
    %c0_10 = arith.constant 0 : index
    %26 = vector.load %arg4[%c0_9, %c0_10] : memref<32x96xbf16, #tpu.memory_space<vmem>>, vector<32x96xbf16>
    %cst_11 = arith.constant dense<0.000000e+00> : vector<16x96xf32>
    %27 = tpu.matmul %25, %26, %cst_11 {dimension_numbers = #tpu.dot_dimension_numbers<[1], [0], [0], [1], [0, 0, 1, 1], [], []>} : vector<16x32xbf16>, vector<32x96xbf16>, vector<16x96xf32> -> vector<16x96xf32>
    %c0_12 = arith.constant 0 : index
    %c0_13 = arith.constant 0 : index
    %28 = vector.load %arg5[%c0_12, %c0_13] : memref<1x96xf32, #tpu.memory_space<vmem>>, vector<1x96xf32>
    %29 = vector.broadcast %28 : vector<1x96xf32> to vector<16x96xf32>
    %30 = arith.addf %27, %29 : vector<16x96xf32>
    %31 = arith.truncf %30 : vector<16x96xf32> to vector<16x96xbf16>
    %c0_14 = arith.constant 0 : index
    %c0_15 = arith.constant 0 : index
    %32 = vector.load %arg1[%c0_14, %c0_15] : memref<2x8xf32, #tpu.memory_space<vmem>>, vector<2x8xf32>
    %33 = vector.extract_strided_slice %32 {offsets = [0, 0], sizes = [1, 8], strides = [1, 1]} : vector<2x8xf32> to vector<1x8xf32>
    %34 = vector.shape_cast %33 : vector<1x8xf32> to vector<1x8xf32>
    %35 = vector.broadcast %34 : vector<1x8xf32> to vector<8x8xf32>
    %36 = vector.extract_strided_slice %31 {offsets = [0, 0], sizes = [8, 8], strides = [1, 1]} : vector<16x96xbf16> to vector<8x8xbf16>
    %37 = vector.extract_strided_slice %31 {offsets = [0, 32], sizes = [8, 8], strides = [1, 1]} : vector<16x96xbf16> to vector<8x8xbf16>
    %38 = vector.extract_strided_slice %31 {offsets = [0, 64], sizes = [8, 8], strides = [1, 1]} : vector<16x96xbf16> to vector<8x8xbf16>
    %cst_16 = arith.constant dense<0.000000e+00> : vector<8x8xf32>
    %39 = tpu.matmul %36, %37, %cst_16 {dimension_numbers = #tpu.dot_dimension_numbers<[1], [1], [0], [0], [0, 0, 1, 0], [], []>} : vector<8x8xbf16>, vector<8x8xbf16>, vector<8x8xf32> -> vector<8x8xf32>
    %40 = arith.addf %39, %35 : vector<8x8xf32>
    %cst_17 = arith.constant dense<0xFF800000> : vector<8xf32>
    %41 = vector.multi_reduction <maximumf>, %40, %cst_17 [1] : vector<8x8xf32> to vector<8xf32>
    %42 = vector.shape_cast %41 : vector<8xf32> to vector<8x1xf32>
    %43 = vector.broadcast %42 : vector<8x1xf32> to vector<8x8xf32>
    %44 = arith.subf %40, %43 : vector<8x8xf32>
    %45 = math.exp %44 : vector<8x8xf32>
    %cst_18 = arith.constant dense<0.000000e+00> : vector<8xf32>
    %46 = vector.multi_reduction <add>, %45, %cst_18 [1] : vector<8x8xf32> to vector<8xf32>
    %47 = vector.shape_cast %46 : vector<8xf32> to vector<8x1xf32>
    %48 = arith.truncf %45 : vector<8x8xf32> to vector<8x8xbf16>
    %cst_19 = arith.constant dense<0.000000e+00> : vector<8x8xf32>
    %49 = tpu.matmul %48, %38, %cst_19 {dimension_numbers = #tpu.dot_dimension_numbers<[1], [0], [0], [1], [0, 0, 1, 1], [], []>} : vector<8x8xbf16>, vector<8x8xbf16>, vector<8x8xf32> -> vector<8x8xf32>
    %50 = tpu.reciprocal %47 {approx = true} : vector<8x1xf32> -> vector<8x1xf32>
    %51 = vector.broadcast %50 : vector<8x1xf32> to vector<8x8xf32>
    %52 = arith.mulf %49, %51 : vector<8x8xf32>
    %53 = vector.extract_strided_slice %31 {offsets = [0, 8], sizes = [8, 8], strides = [1, 1]} : vector<16x96xbf16> to vector<8x8xbf16>
    %54 = vector.extract_strided_slice %31 {offsets = [0, 40], sizes = [8, 8], strides = [1, 1]} : vector<16x96xbf16> to vector<8x8xbf16>
    %55 = vector.extract_strided_slice %31 {offsets = [0, 72], sizes = [8, 8], strides = [1, 1]} : vector<16x96xbf16> to vector<8x8xbf16>
    %cst_20 = arith.constant dense<0.000000e+00> : vector<8x8xf32>
    %56 = tpu.matmul %53, %54, %cst_20 {dimension_numbers = #tpu.dot_dimension_numbers<[1], [1], [0], [0], [0, 0, 1, 0], [], []>} : vector<8x8xbf16>, vector<8x8xbf16>, vector<8x8xf32> -> vector<8x8xf32>
    %57 = arith.addf %56, %35 : vector<8x8xf32>
    %cst_21 = arith.constant dense<0xFF800000> : vector<8xf32>
    %58 = vector.multi_reduction <maximumf>, %57, %cst_21 [1] : vector<8x8xf32> to vector<8xf32>
    %59 = vector.shape_cast %58 : vector<8xf32> to vector<8x1xf32>
    %60 = vector.broadcast %59 : vector<8x1xf32> to vector<8x8xf32>
    %61 = arith.subf %57, %60 : vector<8x8xf32>
    %62 = math.exp %61 : vector<8x8xf32>
    %cst_22 = arith.constant dense<0.000000e+00> : vector<8xf32>
    %63 = vector.multi_reduction <add>, %62, %cst_22 [1] : vector<8x8xf32> to vector<8xf32>
    %64 = vector.shape_cast %63 : vector<8xf32> to vector<8x1xf32>
    %65 = arith.truncf %62 : vector<8x8xf32> to vector<8x8xbf16>
    %cst_23 = arith.constant dense<0.000000e+00> : vector<8x8xf32>
    %66 = tpu.matmul %65, %55, %cst_23 {dimension_numbers = #tpu.dot_dimension_numbers<[1], [0], [0], [1], [0, 0, 1, 1], [], []>} : vector<8x8xbf16>, vector<8x8xbf16>, vector<8x8xf32> -> vector<8x8xf32>
    %67 = tpu.reciprocal %64 {approx = true} : vector<8x1xf32> -> vector<8x1xf32>
    %68 = vector.broadcast %67 : vector<8x1xf32> to vector<8x8xf32>
    %69 = arith.mulf %66, %68 : vector<8x8xf32>
    %70 = vector.extract_strided_slice %31 {offsets = [0, 16], sizes = [8, 8], strides = [1, 1]} : vector<16x96xbf16> to vector<8x8xbf16>
    %71 = vector.extract_strided_slice %31 {offsets = [0, 48], sizes = [8, 8], strides = [1, 1]} : vector<16x96xbf16> to vector<8x8xbf16>
    %72 = vector.extract_strided_slice %31 {offsets = [0, 80], sizes = [8, 8], strides = [1, 1]} : vector<16x96xbf16> to vector<8x8xbf16>
    %cst_24 = arith.constant dense<0.000000e+00> : vector<8x8xf32>
    %73 = tpu.matmul %70, %71, %cst_24 {dimension_numbers = #tpu.dot_dimension_numbers<[1], [1], [0], [0], [0, 0, 1, 0], [], []>} : vector<8x8xbf16>, vector<8x8xbf16>, vector<8x8xf32> -> vector<8x8xf32>
    %74 = arith.addf %73, %35 : vector<8x8xf32>
    %cst_25 = arith.constant dense<0xFF800000> : vector<8xf32>
    %75 = vector.multi_reduction <maximumf>, %74, %cst_25 [1] : vector<8x8xf32> to vector<8xf32>
    %76 = vector.shape_cast %75 : vector<8xf32> to vector<8x1xf32>
    %77 = vector.broadcast %76 : vector<8x1xf32> to vector<8x8xf32>
    %78 = arith.subf %74, %77 : vector<8x8xf32>
    %79 = math.exp %78 : vector<8x8xf32>
    %cst_26 = arith.constant dense<0.000000e+00> : vector<8xf32>
    %80 = vector.multi_reduction <add>, %79, %cst_26 [1] : vector<8x8xf32> to vector<8xf32>
    %81 = vector.shape_cast %80 : vector<8xf32> to vector<8x1xf32>
    %82 = arith.truncf %79 : vector<8x8xf32> to vector<8x8xbf16>
    %cst_27 = arith.constant dense<0.000000e+00> : vector<8x8xf32>
    %83 = tpu.matmul %82, %72, %cst_27 {dimension_numbers = #tpu.dot_dimension_numbers<[1], [0], [0], [1], [0, 0, 1, 1], [], []>} : vector<8x8xbf16>, vector<8x8xbf16>, vector<8x8xf32> -> vector<8x8xf32>
    %84 = tpu.reciprocal %81 {approx = true} : vector<8x1xf32> -> vector<8x1xf32>
    %85 = vector.broadcast %84 : vector<8x1xf32> to vector<8x8xf32>
    %86 = arith.mulf %83, %85 : vector<8x8xf32>
    %87 = vector.extract_strided_slice %31 {offsets = [0, 24], sizes = [8, 8], strides = [1, 1]} : vector<16x96xbf16> to vector<8x8xbf16>
    %88 = vector.extract_strided_slice %31 {offsets = [0, 56], sizes = [8, 8], strides = [1, 1]} : vector<16x96xbf16> to vector<8x8xbf16>
    %89 = vector.extract_strided_slice %31 {offsets = [0, 88], sizes = [8, 8], strides = [1, 1]} : vector<16x96xbf16> to vector<8x8xbf16>
    %cst_28 = arith.constant dense<0.000000e+00> : vector<8x8xf32>
    %90 = tpu.matmul %87, %88, %cst_28 {dimension_numbers = #tpu.dot_dimension_numbers<[1], [1], [0], [0], [0, 0, 1, 0], [], []>} : vector<8x8xbf16>, vector<8x8xbf16>, vector<8x8xf32> -> vector<8x8xf32>
    %91 = arith.addf %90, %35 : vector<8x8xf32>
    %cst_29 = arith.constant dense<0xFF800000> : vector<8xf32>
    %92 = vector.multi_reduction <maximumf>, %91, %cst_29 [1] : vector<8x8xf32> to vector<8xf32>
    %93 = vector.shape_cast %92 : vector<8xf32> to vector<8x1xf32>
    %94 = vector.broadcast %93 : vector<8x1xf32> to vector<8x8xf32>
    %95 = arith.subf %91, %94 : vector<8x8xf32>
    %96 = math.exp %95 : vector<8x8xf32>
    %cst_30 = arith.constant dense<0.000000e+00> : vector<8xf32>
    %97 = vector.multi_reduction <add>, %96, %cst_30 [1] : vector<8x8xf32> to vector<8xf32>
    %98 = vector.shape_cast %97 : vector<8xf32> to vector<8x1xf32>
    %99 = arith.truncf %96 : vector<8x8xf32> to vector<8x8xbf16>
    %cst_31 = arith.constant dense<0.000000e+00> : vector<8x8xf32>
    %100 = tpu.matmul %99, %89, %cst_31 {dimension_numbers = #tpu.dot_dimension_numbers<[1], [0], [0], [1], [0, 0, 1, 1], [], []>} : vector<8x8xbf16>, vector<8x8xbf16>, vector<8x8xf32> -> vector<8x8xf32>
    %101 = tpu.reciprocal %98 {approx = true} : vector<8x1xf32> -> vector<8x1xf32>
    %102 = vector.broadcast %101 : vector<8x1xf32> to vector<8x8xf32>
    %103 = arith.mulf %100, %102 : vector<8x8xf32>
    %104 = tpu.concatenate %52, %69, %86, %103 in 1 : vector<8x8xf32>, vector<8x8xf32>, vector<8x8xf32>, vector<8x8xf32> -> vector<8x32xf32>
    %105 = vector.extract_strided_slice %32 {offsets = [1, 0], sizes = [1, 8], strides = [1, 1]} : vector<2x8xf32> to vector<1x8xf32>
    %106 = vector.shape_cast %105 : vector<1x8xf32> to vector<1x8xf32>
    %107 = vector.broadcast %106 : vector<1x8xf32> to vector<8x8xf32>
    %108 = vector.extract_strided_slice %31 {offsets = [8, 0], sizes = [8, 8], strides = [1, 1]} : vector<16x96xbf16> to vector<8x8xbf16>
    %109 = vector.extract_strided_slice %31 {offsets = [8, 32], sizes = [8, 8], strides = [1, 1]} : vector<16x96xbf16> to vector<8x8xbf16>
    %110 = vector.extract_strided_slice %31 {offsets = [8, 64], sizes = [8, 8], strides = [1, 1]} : vector<16x96xbf16> to vector<8x8xbf16>
    %cst_32 = arith.constant dense<0.000000e+00> : vector<8x8xf32>
    %111 = tpu.matmul %108, %109, %cst_32 {dimension_numbers = #tpu.dot_dimension_numbers<[1], [1], [0], [0], [0, 0, 1, 0], [], []>} : vector<8x8xbf16>, vector<8x8xbf16>, vector<8x8xf32> -> vector<8x8xf32>
    %112 = arith.addf %111, %107 : vector<8x8xf32>
    %cst_33 = arith.constant dense<0xFF800000> : vector<8xf32>
    %113 = vector.multi_reduction <maximumf>, %112, %cst_33 [1] : vector<8x8xf32> to vector<8xf32>
    %114 = vector.shape_cast %113 : vector<8xf32> to vector<8x1xf32>
    %115 = vector.broadcast %114 : vector<8x1xf32> to vector<8x8xf32>
    %116 = arith.subf %112, %115 : vector<8x8xf32>
    %117 = math.exp %116 : vector<8x8xf32>
    %cst_34 = arith.constant dense<0.000000e+00> : vector<8xf32>
    %118 = vector.multi_reduction <add>, %117, %cst_34 [1] : vector<8x8xf32> to vector<8xf32>
    %119 = vector.shape_cast %118 : vector<8xf32> to vector<8x1xf32>
    %120 = arith.truncf %117 : vector<8x8xf32> to vector<8x8xbf16>
    %cst_35 = arith.constant dense<0.000000e+00> : vector<8x8xf32>
    %121 = tpu.matmul %120, %110, %cst_35 {dimension_numbers = #tpu.dot_dimension_numbers<[1], [0], [0], [1], [0, 0, 1, 1], [], []>} : vector<8x8xbf16>, vector<8x8xbf16>, vector<8x8xf32> -> vector<8x8xf32>
    %122 = tpu.reciprocal %119 {approx = true} : vector<8x1xf32> -> vector<8x1xf32>
    %123 = vector.broadcast %122 : vector<8x1xf32> to vector<8x8xf32>
    %124 = arith.mulf %121, %123 : vector<8x8xf32>
    %125 = vector.extract_strided_slice %31 {offsets = [8, 8], sizes = [8, 8], strides = [1, 1]} : vector<16x96xbf16> to vector<8x8xbf16>
    %126 = vector.extract_strided_slice %31 {offsets = [8, 40], sizes = [8, 8], strides = [1, 1]} : vector<16x96xbf16> to vector<8x8xbf16>
    %127 = vector.extract_strided_slice %31 {offsets = [8, 72], sizes = [8, 8], strides = [1, 1]} : vector<16x96xbf16> to vector<8x8xbf16>
    %cst_36 = arith.constant dense<0.000000e+00> : vector<8x8xf32>
    %128 = tpu.matmul %125, %126, %cst_36 {dimension_numbers = #tpu.dot_dimension_numbers<[1], [1], [0], [0], [0, 0, 1, 0], [], []>} : vector<8x8xbf16>, vector<8x8xbf16>, vector<8x8xf32> -> vector<8x8xf32>
    %129 = arith.addf %128, %107 : vector<8x8xf32>
    %cst_37 = arith.constant dense<0xFF800000> : vector<8xf32>
    %130 = vector.multi_reduction <maximumf>, %129, %cst_37 [1] : vector<8x8xf32> to vector<8xf32>
    %131 = vector.shape_cast %130 : vector<8xf32> to vector<8x1xf32>
    %132 = vector.broadcast %131 : vector<8x1xf32> to vector<8x8xf32>
    %133 = arith.subf %129, %132 : vector<8x8xf32>
    %134 = math.exp %133 : vector<8x8xf32>
    %cst_38 = arith.constant dense<0.000000e+00> : vector<8xf32>
    %135 = vector.multi_reduction <add>, %134, %cst_38 [1] : vector<8x8xf32> to vector<8xf32>
    %136 = vector.shape_cast %135 : vector<8xf32> to vector<8x1xf32>
    %137 = arith.truncf %134 : vector<8x8xf32> to vector<8x8xbf16>
    %cst_39 = arith.constant dense<0.000000e+00> : vector<8x8xf32>
    %138 = tpu.matmul %137, %127, %cst_39 {dimension_numbers = #tpu.dot_dimension_numbers<[1], [0], [0], [1], [0, 0, 1, 1], [], []>} : vector<8x8xbf16>, vector<8x8xbf16>, vector<8x8xf32> -> vector<8x8xf32>
    %139 = tpu.reciprocal %136 {approx = true} : vector<8x1xf32> -> vector<8x1xf32>
    %140 = vector.broadcast %139 : vector<8x1xf32> to vector<8x8xf32>
    %141 = arith.mulf %138, %140 : vector<8x8xf32>
    %142 = vector.extract_strided_slice %31 {offsets = [8, 16], sizes = [8, 8], strides = [1, 1]} : vector<16x96xbf16> to vector<8x8xbf16>
    %143 = vector.extract_strided_slice %31 {offsets = [8, 48], sizes = [8, 8], strides = [1, 1]} : vector<16x96xbf16> to vector<8x8xbf16>
    %144 = vector.extract_strided_slice %31 {offsets = [8, 80], sizes = [8, 8], strides = [1, 1]} : vector<16x96xbf16> to vector<8x8xbf16>
    %cst_40 = arith.constant dense<0.000000e+00> : vector<8x8xf32>
    %145 = tpu.matmul %142, %143, %cst_40 {dimension_numbers = #tpu.dot_dimension_numbers<[1], [1], [0], [0], [0, 0, 1, 0], [], []>} : vector<8x8xbf16>, vector<8x8xbf16>, vector<8x8xf32> -> vector<8x8xf32>
    %146 = arith.addf %145, %107 : vector<8x8xf32>
    %cst_41 = arith.constant dense<0xFF800000> : vector<8xf32>
    %147 = vector.multi_reduction <maximumf>, %146, %cst_41 [1] : vector<8x8xf32> to vector<8xf32>
    %148 = vector.shape_cast %147 : vector<8xf32> to vector<8x1xf32>
    %149 = vector.broadcast %148 : vector<8x1xf32> to vector<8x8xf32>
    %150 = arith.subf %146, %149 : vector<8x8xf32>
    %151 = math.exp %150 : vector<8x8xf32>
    %cst_42 = arith.constant dense<0.000000e+00> : vector<8xf32>
    %152 = vector.multi_reduction <add>, %151, %cst_42 [1] : vector<8x8xf32> to vector<8xf32>
    %153 = vector.shape_cast %152 : vector<8xf32> to vector<8x1xf32>
    %154 = arith.truncf %151 : vector<8x8xf32> to vector<8x8xbf16>
    %cst_43 = arith.constant dense<0.000000e+00> : vector<8x8xf32>
    %155 = tpu.matmul %154, %144, %cst_43 {dimension_numbers = #tpu.dot_dimension_numbers<[1], [0], [0], [1], [0, 0, 1, 1], [], []>} : vector<8x8xbf16>, vector<8x8xbf16>, vector<8x8xf32> -> vector<8x8xf32>
    %156 = tpu.reciprocal %153 {approx = true} : vector<8x1xf32> -> vector<8x1xf32>
    %157 = vector.broadcast %156 : vector<8x1xf32> to vector<8x8xf32>
    %158 = arith.mulf %155, %157 : vector<8x8xf32>
    %159 = vector.extract_strided_slice %31 {offsets = [8, 24], sizes = [8, 8], strides = [1, 1]} : vector<16x96xbf16> to vector<8x8xbf16>
    %160 = vector.extract_strided_slice %31 {offsets = [8, 56], sizes = [8, 8], strides = [1, 1]} : vector<16x96xbf16> to vector<8x8xbf16>
    %161 = vector.extract_strided_slice %31 {offsets = [8, 88], sizes = [8, 8], strides = [1, 1]} : vector<16x96xbf16> to vector<8x8xbf16>
    %cst_44 = arith.constant dense<0.000000e+00> : vector<8x8xf32>
    %162 = tpu.matmul %159, %160, %cst_44 {dimension_numbers = #tpu.dot_dimension_numbers<[1], [1], [0], [0], [0, 0, 1, 0], [], []>} : vector<8x8xbf16>, vector<8x8xbf16>, vector<8x8xf32> -> vector<8x8xf32>
    %163 = arith.addf %162, %107 : vector<8x8xf32>
    %cst_45 = arith.constant dense<0xFF800000> : vector<8xf32>
    %164 = vector.multi_reduction <maximumf>, %163, %cst_45 [1] : vector<8x8xf32> to vector<8xf32>
    %165 = vector.shape_cast %164 : vector<8xf32> to vector<8x1xf32>
    %166 = vector.broadcast %165 : vector<8x1xf32> to vector<8x8xf32>
    %167 = arith.subf %163, %166 : vector<8x8xf32>
    %168 = math.exp %167 : vector<8x8xf32>
    %cst_46 = arith.constant dense<0.000000e+00> : vector<8xf32>
    %169 = vector.multi_reduction <add>, %168, %cst_46 [1] : vector<8x8xf32> to vector<8xf32>
    %170 = vector.shape_cast %169 : vector<8xf32> to vector<8x1xf32>
    %171 = arith.truncf %168 : vector<8x8xf32> to vector<8x8xbf16>
    %cst_47 = arith.constant dense<0.000000e+00> : vector<8x8xf32>
    %172 = tpu.matmul %171, %161, %cst_47 {dimension_numbers = #tpu.dot_dimension_numbers<[1], [0], [0], [1], [0, 0, 1, 1], [], []>} : vector<8x8xbf16>, vector<8x8xbf16>, vector<8x8xf32> -> vector<8x8xf32>
    %173 = tpu.reciprocal %170 {approx = true} : vector<8x1xf32> -> vector<8x1xf32>
    %174 = vector.broadcast %173 : vector<8x1xf32> to vector<8x8xf32>
    %175 = arith.mulf %172, %174 : vector<8x8xf32>
    %176 = tpu.concatenate %124, %141, %158, %175 in 1 : vector<8x8xf32>, vector<8x8xf32>, vector<8x8xf32>, vector<8x8xf32> -> vector<8x32xf32>
    %177 = tpu.concatenate %104, %176 in 0 : vector<8x32xf32>, vector<8x32xf32> -> vector<16x32xf32>
    %178 = arith.truncf %177 : vector<16x32xf32> to vector<16x32xbf16>
    %c0_48 = arith.constant 0 : index
    %c0_49 = arith.constant 0 : index
    %179 = vector.load %arg6[%c0_48, %c0_49] : memref<32x32xbf16, #tpu.memory_space<vmem>>, vector<32x32xbf16>
    %cst_50 = arith.constant dense<0.000000e+00> : vector<16x32xf32>
    %180 = tpu.matmul %178, %179, %cst_50 {dimension_numbers = #tpu.dot_dimension_numbers<[1], [0], [0], [1], [0, 0, 1, 1], [], []>} : vector<16x32xbf16>, vector<32x32xbf16>, vector<16x32xf32> -> vector<16x32xf32>
    %c0_51 = arith.constant 0 : index
    %c0_52 = arith.constant 0 : index
    %181 = vector.load %arg7[%c0_51, %c0_52] : memref<1x32xf32, #tpu.memory_space<vmem>>, vector<1x32xf32>
    %182 = vector.broadcast %181 : vector<1x32xf32> to vector<16x32xf32>
    %183 = arith.addf %180, %182 : vector<16x32xf32>
    %184 = arith.addf %183, %24 : vector<16x32xf32>
    %cst_53 = arith.constant dense<0.000000e+00> : vector<16xf32>
    %185 = vector.multi_reduction <add>, %184, %cst_53 [1] : vector<16x32xf32> to vector<16xf32>
    %186 = vector.shape_cast %185 : vector<16xf32> to vector<16x1xf32>
    %cst_54 = arith.constant 3.200000e+01 : f32
    %187 = vector.broadcast %cst_54 : f32 to vector<16x1xf32>
    %188 = arith.divf %186, %187 : vector<16x1xf32>
    %189 = vector.broadcast %188 : vector<16x1xf32> to vector<16x32xf32>
    %190 = arith.subf %184, %189 : vector<16x32xf32>
    %191 = arith.mulf %190, %190 : vector<16x32xf32>
    %cst_55 = arith.constant dense<0.000000e+00> : vector<16xf32>
    %192 = vector.multi_reduction <add>, %191, %cst_55 [1] : vector<16x32xf32> to vector<16xf32>
    %193 = vector.shape_cast %192 : vector<16xf32> to vector<16x1xf32>
    %cst_56 = arith.constant 3.200000e+01 : f32
    %194 = vector.broadcast %cst_56 : f32 to vector<16x1xf32>
    %195 = arith.divf %193, %194 : vector<16x1xf32>
    %196 = vector.broadcast %188 : vector<16x1xf32> to vector<16x32xf32>
    %197 = arith.subf %184, %196 : vector<16x32xf32>
    %cst_57 = arith.constant 9.99999996E-13 : f32
    %198 = vector.broadcast %cst_57 : f32 to vector<16x1xf32>
    %199 = arith.addf %195, %198 : vector<16x1xf32>
    %200 = math.rsqrt %199 : vector<16x1xf32>
    %201 = vector.broadcast %200 : vector<16x1xf32> to vector<16x32xf32>
    %202 = arith.mulf %197, %201 : vector<16x32xf32>
    %c0_58 = arith.constant 0 : index
    %c0_59 = arith.constant 0 : index
    %203 = vector.load %arg8[%c0_58, %c0_59] : memref<1x32xf32, #tpu.memory_space<vmem>>, vector<1x32xf32>
    %204 = vector.broadcast %203 : vector<1x32xf32> to vector<16x32xf32>
    %205 = arith.mulf %202, %204 : vector<16x32xf32>
    %c0_60 = arith.constant 0 : index
    %c0_61 = arith.constant 0 : index
    %206 = vector.load %arg9[%c0_60, %c0_61] : memref<1x32xf32, #tpu.memory_space<vmem>>, vector<1x32xf32>
    %207 = vector.broadcast %206 : vector<1x32xf32> to vector<16x32xf32>
    %208 = arith.addf %205, %207 : vector<16x32xf32>
    %209 = arith.truncf %208 : vector<16x32xf32> to vector<16x32xbf16>
    %c0_62 = arith.constant 0 : index
    %c0_63 = arith.constant 0 : index
    %210 = vector.load %arg10[%c0_62, %c0_63] : memref<32x64xbf16, #tpu.memory_space<vmem>>, vector<32x64xbf16>
    %cst_64 = arith.constant dense<0.000000e+00> : vector<16x64xf32>
    %211 = tpu.matmul %209, %210, %cst_64 {dimension_numbers = #tpu.dot_dimension_numbers<[1], [0], [0], [1], [0, 0, 1, 1], [], []>} : vector<16x32xbf16>, vector<32x64xbf16>, vector<16x64xf32> -> vector<16x64xf32>
    %c0_65 = arith.constant 0 : index
    %c0_66 = arith.constant 0 : index
    %212 = vector.load %arg11[%c0_65, %c0_66] : memref<1x64xf32, #tpu.memory_space<vmem>>, vector<1x64xf32>
    %213 = vector.broadcast %212 : vector<1x64xf32> to vector<16x64xf32>
    %214 = arith.addf %211, %213 : vector<16x64xf32>
    %cst_67 = arith.constant 5.000000e-01 : f32
    %215 = vector.broadcast %cst_67 : f32 to vector<16x64xf32>
    %216 = arith.mulf %215, %214 : vector<16x64xf32>
    %cst_68 = arith.constant 4.471500e-02 : f32
    %217 = vector.broadcast %cst_68 : f32 to vector<16x64xf32>
    %218 = arith.mulf %217, %214 : vector<16x64xf32>
    %219 = arith.mulf %218, %214 : vector<16x64xf32>
    %220 = arith.mulf %219, %214 : vector<16x64xf32>
    %221 = arith.addf %214, %220 : vector<16x64xf32>
    %cst_69 = arith.constant 0.797884583 : f32
    %222 = vector.broadcast %cst_69 : f32 to vector<16x64xf32>
    %223 = arith.mulf %222, %221 : vector<16x64xf32>
    %224 = math.tanh %223 : vector<16x64xf32>
    %cst_70 = arith.constant 1.000000e+00 : f32
    %225 = vector.broadcast %cst_70 : f32 to vector<16x64xf32>
    %226 = arith.addf %225, %224 : vector<16x64xf32>
    %227 = arith.mulf %216, %226 : vector<16x64xf32>
    %228 = arith.truncf %227 : vector<16x64xf32> to vector<16x64xbf16>
    %c0_71 = arith.constant 0 : index
    %c0_72 = arith.constant 0 : index
    %229 = vector.load %arg12[%c0_71, %c0_72] : memref<64x32xbf16, #tpu.memory_space<vmem>>, vector<64x32xbf16>
    %cst_73 = arith.constant dense<0.000000e+00> : vector<16x32xf32>
    %230 = tpu.matmul %228, %229, %cst_73 {dimension_numbers = #tpu.dot_dimension_numbers<[1], [0], [0], [1], [0, 0, 1, 1], [], []>} : vector<16x64xbf16>, vector<64x32xbf16>, vector<16x32xf32> -> vector<16x32xf32>
    %c0_74 = arith.constant 0 : index
    %c0_75 = arith.constant 0 : index
    %231 = vector.load %arg13[%c0_74, %c0_75] : memref<1x32xf32, #tpu.memory_space<vmem>>, vector<1x32xf32>
    %232 = vector.broadcast %231 : vector<1x32xf32> to vector<16x32xf32>
    %233 = arith.addf %230, %232 : vector<16x32xf32>
    %234 = arith.addf %233, %208 : vector<16x32xf32>
    %cst_76 = arith.constant dense<0.000000e+00> : vector<16xf32>
    %235 = vector.multi_reduction <add>, %234, %cst_76 [1] : vector<16x32xf32> to vector<16xf32>
    %236 = vector.shape_cast %235 : vector<16xf32> to vector<16x1xf32>
    %cst_77 = arith.constant 3.200000e+01 : f32
    %237 = vector.broadcast %cst_77 : f32 to vector<16x1xf32>
    %238 = arith.divf %236, %237 : vector<16x1xf32>
    %239 = vector.broadcast %238 : vector<16x1xf32> to vector<16x32xf32>
    %240 = arith.subf %234, %239 : vector<16x32xf32>
    %241 = arith.mulf %240, %240 : vector<16x32xf32>
    %cst_78 = arith.constant dense<0.000000e+00> : vector<16xf32>
    %242 = vector.multi_reduction <add>, %241, %cst_78 [1] : vector<16x32xf32> to vector<16xf32>
    %243 = vector.shape_cast %242 : vector<16xf32> to vector<16x1xf32>
    %cst_79 = arith.constant 3.200000e+01 : f32
    %244 = vector.broadcast %cst_79 : f32 to vector<16x1xf32>
    %245 = arith.divf %243, %244 : vector<16x1xf32>
    %246 = vector.broadcast %238 : vector<16x1xf32> to vector<16x32xf32>
    %247 = arith.subf %234, %246 : vector<16x32xf32>
    %cst_80 = arith.constant 9.99999996E-13 : f32
    %248 = vector.broadcast %cst_80 : f32 to vector<16x1xf32>
    %249 = arith.addf %245, %248 : vector<16x1xf32>
    %250 = math.rsqrt %249 : vector<16x1xf32>
    %251 = vector.broadcast %250 : vector<16x1xf32> to vector<16x32xf32>
    %252 = arith.mulf %247, %251 : vector<16x32xf32>
    %c0_81 = arith.constant 0 : index
    %c0_82 = arith.constant 0 : index
    %253 = vector.load %arg14[%c0_81, %c0_82] : memref<1x32xf32, #tpu.memory_space<vmem>>, vector<1x32xf32>
    %254 = vector.broadcast %253 : vector<1x32xf32> to vector<16x32xf32>
    %255 = arith.mulf %252, %254 : vector<16x32xf32>
    %c0_83 = arith.constant 0 : index
    %c0_84 = arith.constant 0 : index
    %256 = vector.load %arg15[%c0_83, %c0_84] : memref<1x32xf32, #tpu.memory_space<vmem>>, vector<1x32xf32>
    %257 = vector.broadcast %256 : vector<1x32xf32> to vector<16x32xf32>
    %258 = arith.addf %255, %257 : vector<16x32xf32>
    %259 = arith.truncf %258 : vector<16x32xf32> to vector<16x32xbf16>
    %c0_85 = arith.constant 0 : index
    %c0_86 = arith.constant 0 : index
    %260 = vector.load %arg16[%c0_85, %c0_86] : memref<16x32xbf16, #tpu.memory_space<vmem>>, vector<16x32xbf16>
    tpu.vector_store %arg16[%c0_85, %c0_86], %259 {strides = array<i32>} : memref<16x32xbf16, #tpu.memory_space<vmem>>, vector<16x32xbf16>,
    return
  }
}

module attributes {stable_mosaic.version = 11 : i64} {
  func.func @_encoder_layer_kernel(%arg0: memref<16x32xbf16, #tpu.memory_space<vmem>>, %arg1: memref<2x8xf32, #tpu.memory_space<vmem>>, %arg2: memref<1x32xf32, #tpu.memory_space<vmem>>, %arg3: memref<1x32xf32, #tpu.memory_space<vmem>>, %arg4: memref<32x96xbf16, #tpu.memory_space<vmem>>, %arg5: memref<1x96xf32, #tpu.memory_space<vmem>>, %arg6: memref<32x32xbf16, #tpu.memory_space<vmem>>, %arg7: memref<1x32xf32, #tpu.memory_space<vmem>>, %arg8: memref<1x32xf32, #tpu.memory_space<vmem>>, %arg9: memref<1x32xf32, #tpu.memory_space<vmem>>, %arg10: memref<32x64xbf16, #tpu.memory_space<vmem>>, %arg11: memref<1x64xf32, #tpu.memory_space<vmem>>, %arg12: memref<64x32xbf16, #tpu.memory_space<vmem>>, %arg13: memref<1x32xf32, #tpu.memory_space<vmem>>, %arg14: memref<1x32xf32, #tpu.memory_space<vmem>>, %arg15: memref<1x32xf32, #tpu.memory_space<vmem>>, %arg16: memref<16x32xbf16, #tpu.memory_space<vmem>>) attributes {dimension_semantics = [], scalar_prefetch = 0 : i64, scratch_operands = 0 : i64, tpu.core_type = #tpu.core_type<tc>} {
    %c0 = arith.constant 0 : index
    %c0_0 = arith.constant 0 : index
    %0 = vector.load %arg0[%c0, %c0_0] : memref<16x32xbf16, #tpu.memory_space<vmem>>, vector<16x32xbf16>
    %1 = arith.extf %0 : vector<16x32xbf16> to vector<16x32xf32>
    %2 = arith.truncf %1 : vector<16x32xf32> to vector<16x32xbf16>
    %c0_1 = arith.constant 0 : index
    %c0_2 = arith.constant 0 : index
    %3 = vector.load %arg4[%c0_1, %c0_2] : memref<32x96xbf16, #tpu.memory_space<vmem>>, vector<32x96xbf16>
    %cst = arith.constant dense<0.000000e+00> : vector<16x96xf32>
    %4 = tpu.matmul %2, %3, %cst {dimension_numbers = #tpu.dot_dimension_numbers<[1], [0], [0], [1], [0, 0, 1, 1], [], []>} : vector<16x32xbf16>, vector<32x96xbf16>, vector<16x96xf32> -> vector<16x96xf32>
    %c0_3 = arith.constant 0 : index
    %c0_4 = arith.constant 0 : index
    %5 = vector.load %arg5[%c0_3, %c0_4] : memref<1x96xf32, #tpu.memory_space<vmem>>, vector<1x96xf32>
    %6 = vector.broadcast %5 : vector<1x96xf32> to vector<16x96xf32>
    %7 = arith.addf %4, %6 : vector<16x96xf32>
    %8 = arith.truncf %7 : vector<16x96xf32> to vector<16x96xbf16>
    %c0_5 = arith.constant 0 : index
    %c0_6 = arith.constant 0 : index
    %9 = vector.load %arg1[%c0_5, %c0_6] : memref<2x8xf32, #tpu.memory_space<vmem>>, vector<2x8xf32>
    %10 = vector.extract_strided_slice %9 {offsets = [0, 0], sizes = [1, 8], strides = [1, 1]} : vector<2x8xf32> to vector<1x8xf32>
    %11 = vector.shape_cast %10 : vector<1x8xf32> to vector<1x8xf32>
    %12 = vector.broadcast %11 : vector<1x8xf32> to vector<8x8xf32>
    %13 = vector.extract_strided_slice %8 {offsets = [0, 0], sizes = [8, 8], strides = [1, 1]} : vector<16x96xbf16> to vector<8x8xbf16>
    %14 = vector.extract_strided_slice %8 {offsets = [0, 32], sizes = [8, 8], strides = [1, 1]} : vector<16x96xbf16> to vector<8x8xbf16>
    %15 = vector.extract_strided_slice %8 {offsets = [0, 64], sizes = [8, 8], strides = [1, 1]} : vector<16x96xbf16> to vector<8x8xbf16>
    %cst_7 = arith.constant dense<0.000000e+00> : vector<8x8xf32>
    %16 = tpu.matmul %13, %14, %cst_7 {dimension_numbers = #tpu.dot_dimension_numbers<[1], [1], [0], [0], [0, 0, 1, 0], [], []>} : vector<8x8xbf16>, vector<8x8xbf16>, vector<8x8xf32> -> vector<8x8xf32>
    %17 = arith.addf %16, %12 : vector<8x8xf32>
    %cst_8 = arith.constant dense<0xFF800000> : vector<8xf32>
    %18 = vector.multi_reduction <maximumf>, %17, %cst_8 [1] : vector<8x8xf32> to vector<8xf32>
    %19 = vector.shape_cast %18 : vector<8xf32> to vector<8x1xf32>
    %20 = vector.broadcast %19 : vector<8x1xf32> to vector<8x8xf32>
    %21 = arith.subf %17, %20 : vector<8x8xf32>
    %22 = math.exp %21 : vector<8x8xf32>
    %cst_9 = arith.constant dense<0.000000e+00> : vector<8xf32>
    %23 = vector.multi_reduction <add>, %22, %cst_9 [1] : vector<8x8xf32> to vector<8xf32>
    %24 = vector.shape_cast %23 : vector<8xf32> to vector<8x1xf32>
    %25 = arith.truncf %22 : vector<8x8xf32> to vector<8x8xbf16>
    %cst_10 = arith.constant dense<0.000000e+00> : vector<8x8xf32>
    %26 = tpu.matmul %25, %15, %cst_10 {dimension_numbers = #tpu.dot_dimension_numbers<[1], [0], [0], [1], [0, 0, 1, 1], [], []>} : vector<8x8xbf16>, vector<8x8xbf16>, vector<8x8xf32> -> vector<8x8xf32>
    %27 = tpu.reciprocal %24 {approx = true} : vector<8x1xf32> -> vector<8x1xf32>
    %28 = vector.broadcast %27 : vector<8x1xf32> to vector<8x8xf32>
    %29 = arith.mulf %26, %28 : vector<8x8xf32>
    %30 = vector.extract_strided_slice %8 {offsets = [0, 8], sizes = [8, 8], strides = [1, 1]} : vector<16x96xbf16> to vector<8x8xbf16>
    %31 = vector.extract_strided_slice %8 {offsets = [0, 40], sizes = [8, 8], strides = [1, 1]} : vector<16x96xbf16> to vector<8x8xbf16>
    %32 = vector.extract_strided_slice %8 {offsets = [0, 72], sizes = [8, 8], strides = [1, 1]} : vector<16x96xbf16> to vector<8x8xbf16>
    %cst_11 = arith.constant dense<0.000000e+00> : vector<8x8xf32>
    %33 = tpu.matmul %30, %31, %cst_11 {dimension_numbers = #tpu.dot_dimension_numbers<[1], [1], [0], [0], [0, 0, 1, 0], [], []>} : vector<8x8xbf16>, vector<8x8xbf16>, vector<8x8xf32> -> vector<8x8xf32>
    %34 = arith.addf %33, %12 : vector<8x8xf32>
    %cst_12 = arith.constant dense<0xFF800000> : vector<8xf32>
    %35 = vector.multi_reduction <maximumf>, %34, %cst_12 [1] : vector<8x8xf32> to vector<8xf32>
    %36 = vector.shape_cast %35 : vector<8xf32> to vector<8x1xf32>
    %37 = vector.broadcast %36 : vector<8x1xf32> to vector<8x8xf32>
    %38 = arith.subf %34, %37 : vector<8x8xf32>
    %39 = math.exp %38 : vector<8x8xf32>
    %cst_13 = arith.constant dense<0.000000e+00> : vector<8xf32>
    %40 = vector.multi_reduction <add>, %39, %cst_13 [1] : vector<8x8xf32> to vector<8xf32>
    %41 = vector.shape_cast %40 : vector<8xf32> to vector<8x1xf32>
    %42 = arith.truncf %39 : vector<8x8xf32> to vector<8x8xbf16>
    %cst_14 = arith.constant dense<0.000000e+00> : vector<8x8xf32>
    %43 = tpu.matmul %42, %32, %cst_14 {dimension_numbers = #tpu.dot_dimension_numbers<[1], [0], [0], [1], [0, 0, 1, 1], [], []>} : vector<8x8xbf16>, vector<8x8xbf16>, vector<8x8xf32> -> vector<8x8xf32>
    %44 = tpu.reciprocal %41 {approx = true} : vector<8x1xf32> -> vector<8x1xf32>
    %45 = vector.broadcast %44 : vector<8x1xf32> to vector<8x8xf32>
    %46 = arith.mulf %43, %45 : vector<8x8xf32>
    %47 = vector.extract_strided_slice %8 {offsets = [0, 16], sizes = [8, 8], strides = [1, 1]} : vector<16x96xbf16> to vector<8x8xbf16>
    %48 = vector.extract_strided_slice %8 {offsets = [0, 48], sizes = [8, 8], strides = [1, 1]} : vector<16x96xbf16> to vector<8x8xbf16>
    %49 = vector.extract_strided_slice %8 {offsets = [0, 80], sizes = [8, 8], strides = [1, 1]} : vector<16x96xbf16> to vector<8x8xbf16>
    %cst_15 = arith.constant dense<0.000000e+00> : vector<8x8xf32>
    %50 = tpu.matmul %47, %48, %cst_15 {dimension_numbers = #tpu.dot_dimension_numbers<[1], [1], [0], [0], [0, 0, 1, 0], [], []>} : vector<8x8xbf16>, vector<8x8xbf16>, vector<8x8xf32> -> vector<8x8xf32>
    %51 = arith.addf %50, %12 : vector<8x8xf32>
    %cst_16 = arith.constant dense<0xFF800000> : vector<8xf32>
    %52 = vector.multi_reduction <maximumf>, %51, %cst_16 [1] : vector<8x8xf32> to vector<8xf32>
    %53 = vector.shape_cast %52 : vector<8xf32> to vector<8x1xf32>
    %54 = vector.broadcast %53 : vector<8x1xf32> to vector<8x8xf32>
    %55 = arith.subf %51, %54 : vector<8x8xf32>
    %56 = math.exp %55 : vector<8x8xf32>
    %cst_17 = arith.constant dense<0.000000e+00> : vector<8xf32>
    %57 = vector.multi_reduction <add>, %56, %cst_17 [1] : vector<8x8xf32> to vector<8xf32>
    %58 = vector.shape_cast %57 : vector<8xf32> to vector<8x1xf32>
    %59 = arith.truncf %56 : vector<8x8xf32> to vector<8x8xbf16>
    %cst_18 = arith.constant dense<0.000000e+00> : vector<8x8xf32>
    %60 = tpu.matmul %59, %49, %cst_18 {dimension_numbers = #tpu.dot_dimension_numbers<[1], [0], [0], [1], [0, 0, 1, 1], [], []>} : vector<8x8xbf16>, vector<8x8xbf16>, vector<8x8xf32> -> vector<8x8xf32>
    %61 = tpu.reciprocal %58 {approx = true} : vector<8x1xf32> -> vector<8x1xf32>
    %62 = vector.broadcast %61 : vector<8x1xf32> to vector<8x8xf32>
    %63 = arith.mulf %60, %62 : vector<8x8xf32>
    %64 = vector.extract_strided_slice %8 {offsets = [0, 24], sizes = [8, 8], strides = [1, 1]} : vector<16x96xbf16> to vector<8x8xbf16>
    %65 = vector.extract_strided_slice %8 {offsets = [0, 56], sizes = [8, 8], strides = [1, 1]} : vector<16x96xbf16> to vector<8x8xbf16>
    %66 = vector.extract_strided_slice %8 {offsets = [0, 88], sizes = [8, 8], strides = [1, 1]} : vector<16x96xbf16> to vector<8x8xbf16>
    %cst_19 = arith.constant dense<0.000000e+00> : vector<8x8xf32>
    %67 = tpu.matmul %64, %65, %cst_19 {dimension_numbers = #tpu.dot_dimension_numbers<[1], [1], [0], [0], [0, 0, 1, 0], [], []>} : vector<8x8xbf16>, vector<8x8xbf16>, vector<8x8xf32> -> vector<8x8xf32>
    %68 = arith.addf %67, %12 : vector<8x8xf32>
    %cst_20 = arith.constant dense<0xFF800000> : vector<8xf32>
    %69 = vector.multi_reduction <maximumf>, %68, %cst_20 [1] : vector<8x8xf32> to vector<8xf32>
    %70 = vector.shape_cast %69 : vector<8xf32> to vector<8x1xf32>
    %71 = vector.broadcast %70 : vector<8x1xf32> to vector<8x8xf32>
    %72 = arith.subf %68, %71 : vector<8x8xf32>
    %73 = math.exp %72 : vector<8x8xf32>
    %cst_21 = arith.constant dense<0.000000e+00> : vector<8xf32>
    %74 = vector.multi_reduction <add>, %73, %cst_21 [1] : vector<8x8xf32> to vector<8xf32>
    %75 = vector.shape_cast %74 : vector<8xf32> to vector<8x1xf32>
    %76 = arith.truncf %73 : vector<8x8xf32> to vector<8x8xbf16>
    %cst_22 = arith.constant dense<0.000000e+00> : vector<8x8xf32>
    %77 = tpu.matmul %76, %66, %cst_22 {dimension_numbers = #tpu.dot_dimension_numbers<[1], [0], [0], [1], [0, 0, 1, 1], [], []>} : vector<8x8xbf16>, vector<8x8xbf16>, vector<8x8xf32> -> vector<8x8xf32>
    %78 = tpu.reciprocal %75 {approx = true} : vector<8x1xf32> -> vector<8x1xf32>
    %79 = vector.broadcast %78 : vector<8x1xf32> to vector<8x8xf32>
    %80 = arith.mulf %77, %79 : vector<8x8xf32>
    %81 = tpu.concatenate %29, %46, %63, %80 in 1 : vector<8x8xf32>, vector<8x8xf32>, vector<8x8xf32>, vector<8x8xf32> -> vector<8x32xf32>
    %82 = vector.extract_strided_slice %9 {offsets = [1, 0], sizes = [1, 8], strides = [1, 1]} : vector<2x8xf32> to vector<1x8xf32>
    %83 = vector.shape_cast %82 : vector<1x8xf32> to vector<1x8xf32>
    %84 = vector.broadcast %83 : vector<1x8xf32> to vector<8x8xf32>
    %85 = vector.extract_strided_slice %8 {offsets = [8, 0], sizes = [8, 8], strides = [1, 1]} : vector<16x96xbf16> to vector<8x8xbf16>
    %86 = vector.extract_strided_slice %8 {offsets = [8, 32], sizes = [8, 8], strides = [1, 1]} : vector<16x96xbf16> to vector<8x8xbf16>
    %87 = vector.extract_strided_slice %8 {offsets = [8, 64], sizes = [8, 8], strides = [1, 1]} : vector<16x96xbf16> to vector<8x8xbf16>
    %cst_23 = arith.constant dense<0.000000e+00> : vector<8x8xf32>
    %88 = tpu.matmul %85, %86, %cst_23 {dimension_numbers = #tpu.dot_dimension_numbers<[1], [1], [0], [0], [0, 0, 1, 0], [], []>} : vector<8x8xbf16>, vector<8x8xbf16>, vector<8x8xf32> -> vector<8x8xf32>
    %89 = arith.addf %88, %84 : vector<8x8xf32>
    %cst_24 = arith.constant dense<0xFF800000> : vector<8xf32>
    %90 = vector.multi_reduction <maximumf>, %89, %cst_24 [1] : vector<8x8xf32> to vector<8xf32>
    %91 = vector.shape_cast %90 : vector<8xf32> to vector<8x1xf32>
    %92 = vector.broadcast %91 : vector<8x1xf32> to vector<8x8xf32>
    %93 = arith.subf %89, %92 : vector<8x8xf32>
    %94 = math.exp %93 : vector<8x8xf32>
    %cst_25 = arith.constant dense<0.000000e+00> : vector<8xf32>
    %95 = vector.multi_reduction <add>, %94, %cst_25 [1] : vector<8x8xf32> to vector<8xf32>
    %96 = vector.shape_cast %95 : vector<8xf32> to vector<8x1xf32>
    %97 = arith.truncf %94 : vector<8x8xf32> to vector<8x8xbf16>
    %cst_26 = arith.constant dense<0.000000e+00> : vector<8x8xf32>
    %98 = tpu.matmul %97, %87, %cst_26 {dimension_numbers = #tpu.dot_dimension_numbers<[1], [0], [0], [1], [0, 0, 1, 1], [], []>} : vector<8x8xbf16>, vector<8x8xbf16>, vector<8x8xf32> -> vector<8x8xf32>
    %99 = tpu.reciprocal %96 {approx = true} : vector<8x1xf32> -> vector<8x1xf32>
    %100 = vector.broadcast %99 : vector<8x1xf32> to vector<8x8xf32>
    %101 = arith.mulf %98, %100 : vector<8x8xf32>
    %102 = vector.extract_strided_slice %8 {offsets = [8, 8], sizes = [8, 8], strides = [1, 1]} : vector<16x96xbf16> to vector<8x8xbf16>
    %103 = vector.extract_strided_slice %8 {offsets = [8, 40], sizes = [8, 8], strides = [1, 1]} : vector<16x96xbf16> to vector<8x8xbf16>
    %104 = vector.extract_strided_slice %8 {offsets = [8, 72], sizes = [8, 8], strides = [1, 1]} : vector<16x96xbf16> to vector<8x8xbf16>
    %cst_27 = arith.constant dense<0.000000e+00> : vector<8x8xf32>
    %105 = tpu.matmul %102, %103, %cst_27 {dimension_numbers = #tpu.dot_dimension_numbers<[1], [1], [0], [0], [0, 0, 1, 0], [], []>} : vector<8x8xbf16>, vector<8x8xbf16>, vector<8x8xf32> -> vector<8x8xf32>
    %106 = arith.addf %105, %84 : vector<8x8xf32>
    %cst_28 = arith.constant dense<0xFF800000> : vector<8xf32>
    %107 = vector.multi_reduction <maximumf>, %106, %cst_28 [1] : vector<8x8xf32> to vector<8xf32>
    %108 = vector.shape_cast %107 : vector<8xf32> to vector<8x1xf32>
    %109 = vector.broadcast %108 : vector<8x1xf32> to vector<8x8xf32>
    %110 = arith.subf %106, %109 : vector<8x8xf32>
    %111 = math.exp %110 : vector<8x8xf32>
    %cst_29 = arith.constant dense<0.000000e+00> : vector<8xf32>
    %112 = vector.multi_reduction <add>, %111, %cst_29 [1] : vector<8x8xf32> to vector<8xf32>
    %113 = vector.shape_cast %112 : vector<8xf32> to vector<8x1xf32>
    %114 = arith.truncf %111 : vector<8x8xf32> to vector<8x8xbf16>
    %cst_30 = arith.constant dense<0.000000e+00> : vector<8x8xf32>
    %115 = tpu.matmul %114, %104, %cst_30 {dimension_numbers = #tpu.dot_dimension_numbers<[1], [0], [0], [1], [0, 0, 1, 1], [], []>} : vector<8x8xbf16>, vector<8x8xbf16>, vector<8x8xf32> -> vector<8x8xf32>
    %116 = tpu.reciprocal %113 {approx = true} : vector<8x1xf32> -> vector<8x1xf32>
    %117 = vector.broadcast %116 : vector<8x1xf32> to vector<8x8xf32>
    %118 = arith.mulf %115, %117 : vector<8x8xf32>
    %119 = vector.extract_strided_slice %8 {offsets = [8, 16], sizes = [8, 8], strides = [1, 1]} : vector<16x96xbf16> to vector<8x8xbf16>
    %120 = vector.extract_strided_slice %8 {offsets = [8, 48], sizes = [8, 8], strides = [1, 1]} : vector<16x96xbf16> to vector<8x8xbf16>
    %121 = vector.extract_strided_slice %8 {offsets = [8, 80], sizes = [8, 8], strides = [1, 1]} : vector<16x96xbf16> to vector<8x8xbf16>
    %cst_31 = arith.constant dense<0.000000e+00> : vector<8x8xf32>
    %122 = tpu.matmul %119, %120, %cst_31 {dimension_numbers = #tpu.dot_dimension_numbers<[1], [1], [0], [0], [0, 0, 1, 0], [], []>} : vector<8x8xbf16>, vector<8x8xbf16>, vector<8x8xf32> -> vector<8x8xf32>
    %123 = arith.addf %122, %84 : vector<8x8xf32>
    %cst_32 = arith.constant dense<0xFF800000> : vector<8xf32>
    %124 = vector.multi_reduction <maximumf>, %123, %cst_32 [1] : vector<8x8xf32> to vector<8xf32>
    %125 = vector.shape_cast %124 : vector<8xf32> to vector<8x1xf32>
    %126 = vector.broadcast %125 : vector<8x1xf32> to vector<8x8xf32>
    %127 = arith.subf %123, %126 : vector<8x8xf32>
    %128 = math.exp %127 : vector<8x8xf32>
    %cst_33 = arith.constant dense<0.000000e+00> : vector<8xf32>
    %129 = vector.multi_reduction <add>, %128, %cst_33 [1] : vector<8x8xf32> to vector<8xf32>
    %130 = vector.shape_cast %129 : vector<8xf32> to vector<8x1xf32>
    %131 = arith.truncf %128 : vector<8x8xf32> to vector<8x8xbf16>
    %cst_34 = arith.constant dense<0.000000e+00> : vector<8x8xf32>
    %132 = tpu.matmul %131, %121, %cst_34 {dimension_numbers = #tpu.dot_dimension_numbers<[1], [0], [0], [1], [0, 0, 1, 1], [], []>} : vector<8x8xbf16>, vector<8x8xbf16>, vector<8x8xf32> -> vector<8x8xf32>
    %133 = tpu.reciprocal %130 {approx = true} : vector<8x1xf32> -> vector<8x1xf32>
    %134 = vector.broadcast %133 : vector<8x1xf32> to vector<8x8xf32>
    %135 = arith.mulf %132, %134 : vector<8x8xf32>
    %136 = vector.extract_strided_slice %8 {offsets = [8, 24], sizes = [8, 8], strides = [1, 1]} : vector<16x96xbf16> to vector<8x8xbf16>
    %137 = vector.extract_strided_slice %8 {offsets = [8, 56], sizes = [8, 8], strides = [1, 1]} : vector<16x96xbf16> to vector<8x8xbf16>
    %138 = vector.extract_strided_slice %8 {offsets = [8, 88], sizes = [8, 8], strides = [1, 1]} : vector<16x96xbf16> to vector<8x8xbf16>
    %cst_35 = arith.constant dense<0.000000e+00> : vector<8x8xf32>
    %139 = tpu.matmul %136, %137, %cst_35 {dimension_numbers = #tpu.dot_dimension_numbers<[1], [1], [0], [0], [0, 0, 1, 0], [], []>} : vector<8x8xbf16>, vector<8x8xbf16>, vector<8x8xf32> -> vector<8x8xf32>
    %140 = arith.addf %139, %84 : vector<8x8xf32>
    %cst_36 = arith.constant dense<0xFF800000> : vector<8xf32>
    %141 = vector.multi_reduction <maximumf>, %140, %cst_36 [1] : vector<8x8xf32> to vector<8xf32>
    %142 = vector.shape_cast %141 : vector<8xf32> to vector<8x1xf32>
    %143 = vector.broadcast %142 : vector<8x1xf32> to vector<8x8xf32>
    %144 = arith.subf %140, %143 : vector<8x8xf32>
    %145 = math.exp %144 : vector<8x8xf32>
    %cst_37 = arith.constant dense<0.000000e+00> : vector<8xf32>
    %146 = vector.multi_reduction <add>, %145, %cst_37 [1] : vector<8x8xf32> to vector<8xf32>
    %147 = vector.shape_cast %146 : vector<8xf32> to vector<8x1xf32>
    %148 = arith.truncf %145 : vector<8x8xf32> to vector<8x8xbf16>
    %cst_38 = arith.constant dense<0.000000e+00> : vector<8x8xf32>
    %149 = tpu.matmul %148, %138, %cst_38 {dimension_numbers = #tpu.dot_dimension_numbers<[1], [0], [0], [1], [0, 0, 1, 1], [], []>} : vector<8x8xbf16>, vector<8x8xbf16>, vector<8x8xf32> -> vector<8x8xf32>
    %150 = tpu.reciprocal %147 {approx = true} : vector<8x1xf32> -> vector<8x1xf32>
    %151 = vector.broadcast %150 : vector<8x1xf32> to vector<8x8xf32>
    %152 = arith.mulf %149, %151 : vector<8x8xf32>
    %153 = tpu.concatenate %101, %118, %135, %152 in 1 : vector<8x8xf32>, vector<8x8xf32>, vector<8x8xf32>, vector<8x8xf32> -> vector<8x32xf32>
    %154 = tpu.concatenate %81, %153 in 0 : vector<8x32xf32>, vector<8x32xf32> -> vector<16x32xf32>
    %155 = arith.truncf %154 : vector<16x32xf32> to vector<16x32xbf16>
    %c0_39 = arith.constant 0 : index
    %c0_40 = arith.constant 0 : index
    %156 = vector.load %arg6[%c0_39, %c0_40] : memref<32x32xbf16, #tpu.memory_space<vmem>>, vector<32x32xbf16>
    %cst_41 = arith.constant dense<0.000000e+00> : vector<16x32xf32>
    %157 = tpu.matmul %155, %156, %cst_41 {dimension_numbers = #tpu.dot_dimension_numbers<[1], [0], [0], [1], [0, 0, 1, 1], [], []>} : vector<16x32xbf16>, vector<32x32xbf16>, vector<16x32xf32> -> vector<16x32xf32>
    %c0_42 = arith.constant 0 : index
    %c0_43 = arith.constant 0 : index
    %158 = vector.load %arg7[%c0_42, %c0_43] : memref<1x32xf32, #tpu.memory_space<vmem>>, vector<1x32xf32>
    %159 = vector.broadcast %158 : vector<1x32xf32> to vector<16x32xf32>
    %160 = arith.addf %157, %159 : vector<16x32xf32>
    %161 = arith.addf %160, %1 : vector<16x32xf32>
    %cst_44 = arith.constant dense<0.000000e+00> : vector<16xf32>
    %162 = vector.multi_reduction <add>, %161, %cst_44 [1] : vector<16x32xf32> to vector<16xf32>
    %163 = vector.shape_cast %162 : vector<16xf32> to vector<16x1xf32>
    %cst_45 = arith.constant 3.200000e+01 : f32
    %164 = vector.broadcast %cst_45 : f32 to vector<16x1xf32>
    %165 = arith.divf %163, %164 : vector<16x1xf32>
    %166 = vector.broadcast %165 : vector<16x1xf32> to vector<16x32xf32>
    %167 = arith.subf %161, %166 : vector<16x32xf32>
    %168 = arith.mulf %167, %167 : vector<16x32xf32>
    %cst_46 = arith.constant dense<0.000000e+00> : vector<16xf32>
    %169 = vector.multi_reduction <add>, %168, %cst_46 [1] : vector<16x32xf32> to vector<16xf32>
    %170 = vector.shape_cast %169 : vector<16xf32> to vector<16x1xf32>
    %cst_47 = arith.constant 3.200000e+01 : f32
    %171 = vector.broadcast %cst_47 : f32 to vector<16x1xf32>
    %172 = arith.divf %170, %171 : vector<16x1xf32>
    %173 = vector.broadcast %165 : vector<16x1xf32> to vector<16x32xf32>
    %174 = arith.subf %161, %173 : vector<16x32xf32>
    %cst_48 = arith.constant 9.99999996E-13 : f32
    %175 = vector.broadcast %cst_48 : f32 to vector<16x1xf32>
    %176 = arith.addf %172, %175 : vector<16x1xf32>
    %177 = math.rsqrt %176 : vector<16x1xf32>
    %178 = vector.broadcast %177 : vector<16x1xf32> to vector<16x32xf32>
    %179 = arith.mulf %174, %178 : vector<16x32xf32>
    %c0_49 = arith.constant 0 : index
    %c0_50 = arith.constant 0 : index
    %180 = vector.load %arg8[%c0_49, %c0_50] : memref<1x32xf32, #tpu.memory_space<vmem>>, vector<1x32xf32>
    %181 = vector.broadcast %180 : vector<1x32xf32> to vector<16x32xf32>
    %182 = arith.mulf %179, %181 : vector<16x32xf32>
    %c0_51 = arith.constant 0 : index
    %c0_52 = arith.constant 0 : index
    %183 = vector.load %arg9[%c0_51, %c0_52] : memref<1x32xf32, #tpu.memory_space<vmem>>, vector<1x32xf32>
    %184 = vector.broadcast %183 : vector<1x32xf32> to vector<16x32xf32>
    %185 = arith.addf %182, %184 : vector<16x32xf32>
    %186 = arith.truncf %185 : vector<16x32xf32> to vector<16x32xbf16>
    %c0_53 = arith.constant 0 : index
    %c0_54 = arith.constant 0 : index
    %187 = vector.load %arg10[%c0_53, %c0_54] : memref<32x64xbf16, #tpu.memory_space<vmem>>, vector<32x64xbf16>
    %cst_55 = arith.constant dense<0.000000e+00> : vector<16x64xf32>
    %188 = tpu.matmul %186, %187, %cst_55 {dimension_numbers = #tpu.dot_dimension_numbers<[1], [0], [0], [1], [0, 0, 1, 1], [], []>} : vector<16x32xbf16>, vector<32x64xbf16>, vector<16x64xf32> -> vector<16x64xf32>
    %c0_56 = arith.constant 0 : index
    %c0_57 = arith.constant 0 : index
    %189 = vector.load %arg11[%c0_56, %c0_57] : memref<1x64xf32, #tpu.memory_space<vmem>>, vector<1x64xf32>
    %190 = vector.broadcast %189 : vector<1x64xf32> to vector<16x64xf32>
    %191 = arith.addf %188, %190 : vector<16x64xf32>
    %cst_58 = arith.constant 5.000000e-01 : f32
    %192 = vector.broadcast %cst_58 : f32 to vector<16x64xf32>
    %193 = arith.mulf %192, %191 : vector<16x64xf32>
    %cst_59 = arith.constant 4.471500e-02 : f32
    %194 = vector.broadcast %cst_59 : f32 to vector<16x64xf32>
    %195 = arith.mulf %194, %191 : vector<16x64xf32>
    %196 = arith.mulf %195, %191 : vector<16x64xf32>
    %197 = arith.mulf %196, %191 : vector<16x64xf32>
    %198 = arith.addf %191, %197 : vector<16x64xf32>
    %cst_60 = arith.constant 0.797884583 : f32
    %199 = vector.broadcast %cst_60 : f32 to vector<16x64xf32>
    %200 = arith.mulf %199, %198 : vector<16x64xf32>
    %201 = math.tanh %200 : vector<16x64xf32>
    %cst_61 = arith.constant 1.000000e+00 : f32
    %202 = vector.broadcast %cst_61 : f32 to vector<16x64xf32>
    %203 = arith.addf %202, %201 : vector<16x64xf32>
    %204 = arith.mulf %193, %203 : vector<16x64xf32>
    %205 = arith.truncf %204 : vector<16x64xf32> to vector<16x64xbf16>
    %c0_62 = arith.constant 0 : index
    %c0_63 = arith.constant 0 : index
    %206 = vector.load %arg12[%c0_62, %c0_63] : memref<64x32xbf16, #tpu.memory_space<vmem>>, vector<64x32xbf16>
    %cst_64 = arith.constant dense<0.000000e+00> : vector<16x32xf32>
    %207 = tpu.matmul %205, %206, %cst_64 {dimension_numbers = #tpu.dot_dimension_numbers<[1], [0], [0], [1], [0, 0, 1, 1], [], []>} : vector<16x64xbf16>, vector<64x32xbf16>, vector<16x32xf32> -> vector<16x32xf32>
    %c0_65 = arith.constant 0 : index
    %c0_66 = arith.constant 0 : index
    %208 = vector.load %arg13[%c0_65, %c0_66] : memref<1x32xf32, #tpu.memory_space<vmem>>, vector<1x32xf32>
    %209 = vector.broadcast %208 : vector<1x32xf32> to vector<16x32xf32>
    %210 = arith.addf %207, %209 : vector<16x32xf32>
    %211 = arith.addf %210, %185 : vector<16x32xf32>
    %cst_67 = arith.constant dense<0.000000e+00> : vector<16xf32>
    %212 = vector.multi_reduction <add>, %211, %cst_67 [1] : vector<16x32xf32> to vector<16xf32>
    %213 = vector.shape_cast %212 : vector<16xf32> to vector<16x1xf32>
    %cst_68 = arith.constant 3.200000e+01 : f32
    %214 = vector.broadcast %cst_68 : f32 to vector<16x1xf32>
    %215 = arith.divf %213, %214 : vector<16x1xf32>
    %216 = vector.broadcast %215 : vector<16x1xf32> to vector<16x32xf32>
    %217 = arith.subf %211, %216 : vector<16x32xf32>
    %218 = arith.mulf %217, %217 : vector<16x32xf32>
    %cst_69 = arith.constant dense<0.000000e+00> : vector<16xf32>
    %219 = vector.multi_reduction <add>, %218, %cst_69 [1] : vector<16x32xf32> to vector<16xf32>
    %220 = vector.shape_cast %219 : vector<16xf32> to vector<16x1xf32>
    %cst_70 = arith.constant 3.200000e+01 : f32
    %221 = vector.broadcast %cst_70 : f32 to vector<16x1xf32>
    %222 = arith.divf %220, %221 : vector<16x1xf32>
    %223 = vector.broadcast %215 : vector<16x1xf32> to vector<16x32xf32>
    %224 = arith.subf %211, %223 : vector<16x32xf32>
    %cst_71 = arith.constant 9.99999996E-13 : f32
    %225 = vector.broadcast %cst_71 : f32 to vector<16x1xf32>
    %226 = arith.addf %222, %225 : vector<16x1xf32>
    %227 = math.rsqrt %226 : vector<16x1xf32>
    %228 = vector.broadcast %227 : vector<16x1xf32> to vector<16x32xf32>
    %229 = arith.mulf %224, %228 : vector<16x32xf32>
    %c0_72 = arith.constant 0 : index
    %c0_73 = arith.constant 0 : index
    %230 = vector.load %arg14[%c0_72, %c0_73] : memref<1x32xf32, #tpu.memory_space<vmem>>, vector<1x32xf32>
    %231 = vector.broadcast %230 : vector<1x32xf32> to vector<16x32xf32>
    %232 = arith.mulf %229, %231 : vector<16x32xf32>
    %c0_74 = arith.constant 0 : index
    %c0_75 = arith.constant 0 : index
    %233 = vector.load %arg15[%c0_74, %c0_75] : memref<1x32xf32, #tpu.memory_space<vmem>>, vector<1x32xf32>
    %234 = vector.broadcast %233 : vector<1x32xf32> to vector<16x32xf32>
    %235 = arith.addf %232, %234 : vector<16x32xf32>
    %236 = arith.truncf %235 : vector<16x32xf32> to vector<16x32xbf16>
    %c0_76 = arith.constant 0 : index
    %c0_77 = arith.constant 0 : index
    %237 = vector.load %arg16[%c0_76, %c0_77] : memref<16x32xbf16, #tpu.memory_space<vmem>>, vector<16x32xbf16>
    tpu.vector_store %arg16[%c0_76, %c0_77], %236 {strides = array<i32>} : memref<16x32xbf16, #tpu.memory_space<vmem>>, vector<16x32xbf16>,
    return
  }
}

</mosaic_0001>

<bundles_post_ra>
// kernel: textnet_forward.2
= control target key start
LH: loop header
LB: loop body
LE: loop exit
PB: predicated region body
PF: predicated region fallthrough
CT: control target
= control target key end

     0   :  { %vm56_vm0 = vcmask 261120   ;;  %v1749_v15 = vmov 0.0   ;;  %vm1750_vm1 = vmmov 0   ;;  %s1752_s19 = smov 96   ;;  %s1753_s20 = smov 120   ;;  %vm179_vm2 = vcmask 64512   ;;  %s2142_s0 = inlined_call_operand.vmem [shape: f32[16,32], index: 0, kind: input, shape index: {}]   ;;  %s2143_s4 = inlined_call_operand.vmem [shape: bf16[32,96], index: 4, kind: input, shape index: {}]   ;;  %s2144_s2 = inlined_call_operand.vmem [shape: f32[1,32], index: 2, kind: input, shape index: {}]   ;;  %s2145_s3 = inlined_call_operand.vmem [shape: f32[1,32], index: 3, kind: input, shape index: {}]   ;;  %s2146_s5 = inlined_call_operand.vmem [shape: f32[1,96], index: 5, kind: input, shape index: {}]   ;;  %s2147_s1 = inlined_call_operand.vmem [shape: f32[2,8], index: 1, kind: input, shape index: {}]   ;;  %s2148_s6 = inlined_call_operand.vmem [shape: bf16[32,32], index: 6, kind: input, shape index: {}]   ;;  %s2149_s7 = inlined_call_operand.vmem [shape: f32[1,32], index: 7, kind: input, shape index: {}]   ;;  %s2150_s10 = inlined_call_operand.vmem [shape: bf16[32,64], index: 10, kind: input, shape index: {}]   ;;  %s2151_s8 = inlined_call_operand.vmem [shape: f32[1,32], index: 8, kind: input, shape index: {}]   ;;  %s2152_s9 = inlined_call_operand.vmem [shape: f32[1,32], index: 9, kind: input, shape index: {}]   ;;  %s2153_s12 = inlined_call_operand.vmem [shape: bf16[64,32], index: 12, kind: input, shape index: {}]   ;;  %s2154_s11 = inlined_call_operand.vmem [shape: f32[1,64], index: 11, kind: input, shape index: {}]   ;;  %s2155_s13 = inlined_call_operand.vmem [shape: f32[1,32], index: 13, kind: input, shape index: {}]   ;;  %s2156_s14 = inlined_call_operand.vmem [shape: f32[1,32], index: 14, kind: input, shape index: {}]   ;;  %s2157_s15 = inlined_call_operand.vmem [shape: f32[1,32], index: 15, kind: input, shape index: {}]   ;;  %s2158_s16 = inlined_call_operand.vmem [shape: bf16[16,32], index: 16, kind: output, shape index: {}]  }
   0x1   :  { %2160 = sst [smem:[#allocation2_spill]] %s2142_s0  ;;  %v1691_v14 = vld [vmem:[%s2143_s4] sm:$0xff]   ;;  %1528 = vmatprep.subr.bf16.mxu0 %v1749_v15  ;;  %1536 = vmatprep.subr.bf16.mxu1 %v1749_v15  ;;  %v1692_v16 = vld [vmem:[%s2143_s4 + $0x8] sm:$0xff]   ;;  %s1754_s21 = smov 112   ;;  %vm241_vm3 = vcmask 1043456   ;;  %vm630_vm4 = vcmask 130048  }
   0x2   :  { %s2161_s23 = sld [smem:[#allocation2_spill]]  ;;  %1529 = vmatpush3.bf16.msra.mxu0 %v1691_v14  ;;  %1532 = vmatprep.mubr.msk.bf16.mxu0 %vm1750_vm1, %v1749_v15  ;;  %v1438_v25 = vld [vmem:[%s2144_s2] ss:$0 sm:$0xff]  ;;  %s1756_s22 = smov 104   ;;  %vm632_vm5 = vcmask 195584   ;;  %vm1332_vm6 = vcmask 523264  }
   0x3   :  { %1530 = vmatprep.subr.bf16.mxu0 %v1749_v15  ;;  %1538 = vmatprep.mubr.msk.bf16.mxu1 %vm1750_vm1, %v1749_v15  ;;  %v1439_v29 = vld [vmem:[%s2145_s3] ss:$0 sm:$0xff]  ;;  %s1751_s3 = smov 88   ;;  %s1758_s24 = smov 64   ;;  %vm1431_vm7 = vcmask 257024  }
   0x4   :  { %v1440_v34 = vld [vmem:[%s2146_s5] ss:$0 sm:$0xff]  ;;  %s1755_s5 = smov 80   ;;  %s1759_s25 = smov 48  }
   0x5   :  { %s1760_s26 = smov 56   ;;  %s1762_s30 = smov 8  }
   0x6   :  { %1531 = vmatpush3.bf16.msra.mxu0 %v1692_v16  ;;  %s1763_s0 = smov 16   ;;  %s1764_s18 = smov 24  }
   0x7   :  { %1542 = vmatprep.subr.bf16.mxu0 %v1749_v15 }
   0x8   :  { %v54_v0 = vld [vmem:[%s2161_s23] sm:$0xff]  ;;  %v55_v1 = vld [vmem:[%s2161_s23 + $0x8] sm:$0xff]  ;;  %s1757_s23 = smov 72  }
   0x9   :  { %v57_v2 = vsel %vm56_vm0, %v54_v0, 0.0  ;;  %v60_v3 = vsel %vm56_vm0, %v55_v1, 0.0 }
   0xa   :  { %58 = vadd.xlane.f32.xlu0 %v57_v2 }
   0xe   :  { %61 = vadd.xlane.f32.xlu0 %v60_v3  ;;  %v172_v3 = vlaneseq }
  0x97   :  { %v59_v4 = vpop.xlane.xlu0 %58 }
  0x98   :  { %v64_v5 = vmul.f32 0.03125, %v59_v4  ;;  %v173_v4 = vshrl.u32 %v172_v3, 7 }
  0x9a   :  { %v66_v6 = vsub.f32 %v54_v0, %v64_v5  ;;  %v174_v5 = vsub.s32 0, %v173_v4 }
  0x9b   :  { %v62_v7 = vpop.xlane.xlu0 %61 }
  0x9c   :  { %v65_v8 = vmul.f32 0.03125, %v62_v7  ;;  %v68_v9 = vmul.f32 %v66_v6, %v66_v6 }
  0x9e   :  { %v67_v10 = vsub.f32 %v55_v1, %v65_v8  ;;  %v70_v11 = vsel %vm56_vm0, %v68_v9, 0.0 }
  0x9f   :  { %71 = vadd.xlane.f32.xlu1 %v70_v11 }
  0xa0   :  { %v69_v12 = vmul.f32 %v67_v10, %v67_v10 }
  0xa2   :  { %v73_v13 = vsel %vm56_vm0, %v69_v12, 0.0 }
  0xa3   :  { %74 = vadd.xlane.f32.xlu1 %v73_v13 }
 0x12c   :  { %v72_v17 = vpop.xlane.xlu1 %71 }
 0x12d   :  { %v76_v18 = vmul.f32 0.03125, %v72_v17 }
 0x12f   :  { %v78_v19 = vadd.f32 1e-12, %v76_v18 }
 0x130   :  { %v75_v20 = vpop.xlane.xlu1 %74 }
 0x131   :  { %1701 = vrsqrt.f32 %v78_v19  ;;  %v77_v21 = vmul.f32 0.03125, %v75_v20 }
 0x133   :  { %v79_v22 = vadd.f32 1e-12, %v77_v21 }
 0x135   :  { %1703 = vrsqrt.f32 %v79_v22 }
 0x13b   :  { %v1702_v23 = vpop.eup %1701 }
 0x13c   :  { %v82_v24 = vmul.f32 %v1702_v23, %v66_v6  ;;  %v171_v6 = vld [vmem:[%s2147_s1] sm:$0x3]  ;;  %s1761_s1 = smov 40  }
 0x13d   :  { %v175_v7 = vrot.slane %v171_v6, %v174_v5 }
 0x13e   :  { %v91_v28 = vmul.f32 %v1438_v25, %v82_v24 }
 0x13f   :  { %v1704_v26 = vpop.eup %1703 }
 0x140   :  { %v83_v27 = vmul.f32 %v1704_v26, %v67_v10  ;;  %v1880_v31 = vadd.f32 %v1439_v29, %v91_v28 }
 0x142   :  { %v92_v30 = vmul.f32 %v1438_v25, %v83_v27 }
 0x144   :  { %v1882_v32 = vadd.f32 %v1439_v29, %v92_v30 }
 0x146   :  { %v102_v33 = vpack.c.bf16 %v1882_v32, %v1880_v31 }
 0x148   :  { %1533 = vmatmul.mubr.msk.bf16.vlgmr.msra.gmra.mrb[0].mxu0 %vm56_vm0, %v102_v33 }
 0x149   :  { %1544 = vmatprep.mubr.msk.bf16.mxu0 %vm1750_vm1, %v1749_v15 }
 0x21b   :  { %v163_v35 = vpop.f32.mrb[0].mxu0 }
 0x21c   :  { %v1534_v36 = vpop.f32.mrb[1].mxu0  ;;  %v164_v38 = vadd.f32 %v1440_v34, %v163_v35 }
 0x21d   :  { %v166_v37 = vpop.f32.mrb[2].mxu0 }
 0x21e   :  { %v167_v39 = vadd.f32 %v1440_v34, %v166_v37  ;;  %v1535_v40 = vpop.f32.mrb[3].mxu0 }
 0x220   :  { %v1892_v41 = vpack.c.bf16 %v167_v39, %v164_v38 }
 0x222   :  { %289 = vrot.lane.b32.xlu1 %v1892_v41, %s1751_s3  ;;  %177 = vrot.lane.b32.xlu0 %v1892_v41, %s1752_s19  ;;  %v1901_v42 = vrot.slane %v1892_v41, 4 }
 0x226   :  { %287 = vrot.lane.b32.xlu1 %v1892_v41, %s1753_s20  ;;  %397 = vrot.lane.b32.xlu0 %v1892_v41, %s1754_s21 }
 0x22a   :  { %399 = vrot.lane.b32.xlu1 %v1892_v41, %s1755_s5  ;;  %507 = vrot.lane.b32.xlu0 %v1892_v41, %s1756_s22 }
 0x22e   :  { %509 = vrot.lane.b32.xlu1 %v1892_v41, %s1757_s23  ;;  %749 = vrot.lane.b32.xlu0 %v1901_v42, %s1751_s3 }
 0x232   :  { %859 = vrot.lane.b32.xlu0 %v1901_v42, %s1755_s5  ;;  %639 = vrot.lane.b32.xlu1 %v1901_v42, %s1752_s19 }
 0x236   :  { %969 = vrot.lane.b32.xlu0 %v1901_v42, %s1757_s23  ;;  %747 = vrot.lane.b32.xlu1 %v1901_v42, %s1753_s20 }
 0x23a   :  { %236 = vrot.lane.b32.xlu0 %v1892_v41, %s1758_s24  ;;  %857 = vrot.lane.b32.xlu1 %v1901_v42, %s1754_s21 }
 0x23e   :  { %457 = vrot.lane.b32.xlu0 %v1892_v41, %s1759_s25  ;;  %967 = vrot.lane.b32.xlu1 %v1901_v42, %s1756_s22 }
 0x242   :  { %347 = vrot.lane.b32.xlu1 %v1892_v41, %s1760_s26 }
 0x294   :  { %v178_v43 = vpop.permute.xlu0 %177  ;;  %v290_v45 = vpop.permute.xlu1 %289 }
 0x295   :  { %v184_v44 = vsel %vm179_vm2, %v178_v43, 0  ;;  %v295_v49 = vsel %vm179_vm2, %v290_v45, 0 }
 0x296   :  { %1537 = vmatpush3.bf16.xpose.msra.mxu1 %v184_v44 }
 0x297   :  { %1548 = vmatprep.subr.bf16.mxu1 %v1749_v15 }
 0x298   :  { %v398_v46 = vpop.permute.xlu0 %397  ;;  %v288_v47 = vpop.permute.xlu1 %287 }
 0x29c   :  { %v508_v48 = vpop.permute.xlu0 %507  ;;  %v400_v51 = vpop.permute.xlu1 %399 }
 0x29d   :  { %1539 = vmatmul.mubr.msk.bf16.vlgmr.msra.gmra.mrb[0].mxu1 %vm179_vm2, %v1892_v41  ;;  %v405_v53 = vsel %vm179_vm2, %v400_v51, 0 }
 0x29e   :  { %1549 = vmatpush3.bf16.xpose.msra.mxu1 %v295_v49  ;;  %1550 = vmatprep.mubr.msk.bf16.mxu1 %vm1750_vm1, %v1749_v15  ;;  %v636_v49 = vsub.s32 1, %v173_v4 }
 0x29f   :  { %1560 = vmatprep.subr.bf16.mxu1 %v1749_v15 }
 0x2a0   :  { %v750_v50 = vpop.permute.xlu0 %749  ;;  %v510_v55 = vpop.permute.xlu1 %509 }
 0x2a1   :  { %v515_v57 = vsel %vm179_vm2, %v510_v55, 0  ;;  %v755_v61 = vsel %vm179_vm2, %v750_v50, 0  ;;  %v637_v50 = vrot.slane %v171_v6, %v636_v49 }
 0x2a4   :  { %v860_v52 = vpop.permute.xlu0 %859  ;;  %v640_v59 = vpop.permute.xlu1 %639 }
 0x2a5   :  { %1551 = vmatmul.mubr.msk.bf16.vlgmr.msra.gmra.mrb[4].mxu1 %vm179_vm2, %v288_v47  ;;  %v645_v60 = vsel %vm179_vm2, %v640_v59, 0  ;;  %v865_v63 = vsel %vm179_vm2, %v860_v52, 0 }
 0x2a6   :  { %1561 = vmatpush3.bf16.xpose.msra.mxu1 %v405_v53  ;;  %1562 = vmatprep.mubr.msk.bf16.mxu1 %vm1750_vm1, %v1749_v15 }
 0x2a7   :  { %1572 = vmatprep.subr.bf16.mxu1 %v1749_v15 }
 0x2a8   :  { %v970_v54 = vpop.permute.xlu0 %969  ;;  %v748_v62 = vpop.permute.xlu1 %747 }
 0x2a9   :  { %v975_v1 = vsel %vm179_vm2, %v970_v54, 0 }
 0x2ac   :  { %v237_v56 = vpop.permute.xlu0 %236  ;;  %v858_v0 = vpop.permute.xlu1 %857 }
 0x2ad   :  { %v243_v58 = vsel %vm241_vm3, %v237_v56, 0  ;;  %1563 = vmatmul.mubr.msk.bf16.vlgmr.msra.gmra.mrb[8].mxu1 %vm179_vm2, %v398_v46 }
 0x2ae   :  { %1543 = vmatpush3.bf16.msra.mxu0 %v243_v58  ;;  %1573 = vmatpush3.bf16.xpose.msra.mxu1 %v515_v57 }
 0x2af   :  { %1574 = vmatprep.mubr.msk.bf16.mxu1 %vm1750_vm1, %v1749_v15  ;;  %1584 = vmatprep.subr.bf16.mxu1 %v1749_v15 }
 0x2b0   :  { %1554 = vmatprep.subr.bf16.mxu0 %v1749_v15  ;;  %v968_v2 = vpop.permute.xlu1 %967 }
 0x2b5   :  { %1575 = vmatmul.mubr.msk.bf16.vlgmr.msra.gmra.mrb[12].mxu1 %vm179_vm2, %v508_v48 }
 0x2b6   :  { %1585 = vmatpush3.bf16.xpose.msra.mxu1 %v645_v60  ;;  %1586 = vmatprep.mubr.msk.bf16.mxu1 %vm1750_vm1, %v1749_v15 }
 0x2b7   :  { %1596 = vmatprep.subr.bf16.mxu1 %v1749_v15 }
 0x2bd   :  { %1587 = vmatmul.mubr.msk.bf16.vlgmr.msra.gmra.mrb[16].mxu1 %vm179_vm2, %v1901_v42 }
 0x2be   :  { %1597 = vmatpush3.bf16.xpose.msra.mxu1 %v755_v61  ;;  %1598 = vmatprep.mubr.msk.bf16.mxu1 %vm1750_vm1, %v1749_v15 }
 0x2bf   :  { %1608 = vmatprep.subr.bf16.mxu1 %v1749_v15 }
 0x2c5   :  { %1599 = vmatmul.mubr.msk.bf16.vlgmr.msra.gmra.mrb[20].mxu1 %vm179_vm2, %v748_v62  ;;  %v458_v62 = vpop.permute.xlu0 %457 }
 0x2c6   :  { %1609 = vmatpush3.bf16.xpose.msra.mxu1 %v865_v63  ;;  %1610 = vmatprep.mubr.msk.bf16.mxu1 %vm1750_vm1, %v1749_v15 }
 0x2c7   :  { %1620 = vmatprep.subr.bf16.mxu1 %v1749_v15 }
 0x2cd   :  { %1611 = vmatmul.mubr.msk.bf16.vlgmr.msra.gmra.mrb[24].mxu1 %vm179_vm2, %v858_v0 }
 0x2ce   :  { %1621 = vmatpush3.bf16.xpose.msra.mxu1 %v975_v1  ;;  %1622 = vmatprep.mubr.msk.bf16.mxu1 %vm1750_vm1, %v1749_v15 }
 0x2cf   :  { %1632 = vmatprep.subr.bf16.mxu1 %v1749_v15 }
 0x2d5   :  { %1623 = vmatmul.mubr.msk.bf16.vlgmr.msra.gmra.mrb[28].mxu1 %vm179_vm2, %v968_v2  ;;  %v348_v2 = vpop.permute.xlu1 %347 }
 0x2d6   :  { %1636 = vmatprep.mubr.msk.bf16.mxu1 %vm1750_vm1, %v1749_v15 }
 0x370   :  { %v220_v8 = vpop.f32.mrb[0].mxu1 }
 0x371   :  { %v1964_v9 = vadd.f32 %v220_v8, %v175_v7  ;;  %v1540_v10 = vpop.f32.mrb[1].mxu1 }
 0x372   :  { %v223_v11 = vpop.f32.mrb[2].mxu1  ;;  %v353_v10 = vsel %vm241_vm3, %v348_v2, 0 }
 0x373   :  { %v1541_v12 = vpop.f32.mrb[3].mxu1  ;;  %v226_v13 = vsel %vm179_vm2, %v1964_v9, -inf }
 0x374   :  { %227 = vmax.xlane.f32.xlu0 %v226_v13 }
 0x378   :  { %v331_v14 = vpop.f32.mrb[4].mxu1 }
 0x379   :  { %v1968_v16 = vadd.f32 %v331_v14, %v175_v7  ;;  %v1552_v17 = vpop.f32.mrb[5].mxu1 }
 0x37a   :  { %v334_v18 = vpop.f32.mrb[6].mxu1  ;;  %v463_v17 = vsel %vm241_vm3, %v458_v62, 0 }
 0x37b   :  { %v1553_v19 = vpop.f32.mrb[7].mxu1  ;;  %v337_v20 = vsel %vm179_vm2, %v1968_v16, -inf }
 0x37c   :  { %338 = vmax.xlane.f32.xlu1 %v337_v20 }
 0x380   :  { %v441_v21 = vpop.f32.mrb[8].mxu1 }
 0x381   :  { %v1972_v22 = vadd.f32 %v441_v21, %v175_v7  ;;  %v1564_v23 = vpop.f32.mrb[9].mxu1 }
 0x382   :  { %v444_v24 = vpop.f32.mrb[10].mxu1 }
 0x383   :  { %v1565_v25 = vpop.f32.mrb[11].mxu1  ;;  %v447_v26 = vsel %vm179_vm2, %v1972_v22, -inf }
 0x384   :  { %448 = vmax.xlane.f32.xlu0 %v447_v26 }
 0x388   :  { %v551_v27 = vpop.f32.mrb[12].mxu1 }
 0x389   :  { %v1976_v28 = vadd.f32 %v551_v27, %v175_v7  ;;  %v1576_v29 = vpop.f32.mrb[13].mxu1 }
 0x38a   :  { %v554_v30 = vpop.f32.mrb[14].mxu1 }
 0x38b   :  { %v1577_v33 = vpop.f32.mrb[15].mxu1  ;;  %v557_v34 = vsel %vm179_vm2, %v1976_v28, -inf }
 0x38c   :  { %558 = vmax.xlane.f32.xlu0 %v557_v34 }
 0x38d   :  { %697 = vrot.lane.b32.xlu1 %v1901_v42, %s1758_s24 }
 0x390   :  { %v681_v35 = vpop.f32.mrb[16].mxu1 }
 0x391   :  { %v1588_v36 = vpop.f32.mrb[17].mxu1  ;;  %v1983_v55 = vadd.f32 %v681_v35, %v637_v50 }
 0x392   :  { %v684_v37 = vpop.f32.mrb[18].mxu1 }
 0x393   :  { %v1589_v38 = vpop.f32.mrb[19].mxu1  ;;  %v687_v57 = vsel %vm179_vm2, %v1983_v55, -inf }
 0x398   :  { %v791_v39 = vpop.f32.mrb[20].mxu1 }
 0x399   :  { %v1600_v40 = vpop.f32.mrb[21].mxu1  ;;  %v1985_v56 = vadd.f32 %v791_v39, %v637_v50 }
 0x39a   :  { %v794_v43 = vpop.f32.mrb[22].mxu1 }
 0x39b   :  { %v1601_v44 = vpop.f32.mrb[23].mxu1  ;;  %v797_v58 = vsel %vm179_vm2, %v1985_v56, -inf }
 0x3a0   :  { %v901_v45 = vpop.f32.mrb[24].mxu1 }
 0x3a1   :  { %v1612_v46 = vpop.f32.mrb[25].mxu1 }
 0x3a2   :  { %567 = vrot.lane.b32.xlu0 %v1892_v41, %s1761_s1  ;;  %v904_v47 = vpop.f32.mrb[26].mxu1  ;;  %v1991_v41 = vadd.f32 %v901_v45, %v637_v50 }
 0x3a3   :  { %v1613_v48 = vpop.f32.mrb[27].mxu1 }
 0x3a4   :  { %v907_v59 = vsel %vm179_vm2, %v1991_v41, -inf }
 0x3a8   :  { %v1011_v51 = vpop.f32.mrb[28].mxu1 }
 0x3a9   :  { %v1624_v52 = vpop.f32.mrb[29].mxu1  ;;  %v1999_v60 = vadd.f32 %v1011_v51, %v637_v50 }
 0x3aa   :  { %v1014_v53 = vpop.f32.mrb[30].mxu1 }
 0x3ab   :  { %v1625_v54 = vpop.f32.mrb[31].mxu1  ;;  %v1017_v61 = vsel %vm179_vm2, %v1999_v60, -inf }
 0x3b1   :  { %688 = vmax.xlane.f32.xlu1 %v687_v57 }
 0x3b5   :  { %798 = vmax.xlane.f32.xlu1 %v797_v58 }
 0x3c1   :  { %908 = vmax.xlane.f32.xlu0 %v907_v59 }
 0x3c6   :  { %807 = vrot.lane.b32.xlu1 %v1901_v42, %s1760_s26 }
 0x3d7   :  { %917 = vrot.lane.b32.xlu0 %v1901_v42, %s1759_s25 }
 0x3ea   :  { %1018 = vmax.xlane.f32.xlu1 %v1017_v61 }
 0x3fb   :  { %1027 = vrot.lane.b32.xlu1 %v1901_v42, %s1761_s1 }
 0x401   :  { %v228_v63 = vpop.xlane.xlu0 %227 }
 0x402   :  { %v229_v0 = vsub.f32 %v1964_v9, %v228_v63 }
 0x404   :  { %v230_v1 = vmul.f32 1.442695, %v229_v0 }
 0x406   :  { %1705 = vpow2.f32 %v230_v1 }
 0x409   :  { %v339_v3 = vpop.xlane.xlu1 %338 }
 0x40a   :  { %v340_v4 = vsub.f32 %v1968_v16, %v339_v3 }
 0x40c   :  { %v341_v5 = vmul.f32 1.442695, %v340_v4 }
 0x40d   :  { %v698_v25 = vpop.permute.xlu1 %697 }
 0x40e   :  { %1707 = vpow2.f32 %v341_v5  ;;  %v703_v27 = vsel %vm241_vm3, %v698_v25, 0 }
 0x410   :  { %v2006_v6 = vpop.eup %1705 }
 0x411   :  { %v449_v7 = vpop.xlane.xlu0 %448  ;;  %v235_v8 = vpack.c.bf16 %v2006_v6, %v2006_v6  ;;  %v232_v54 = vsel %vm179_vm2, %v2006_v6, 0.0 }
 0x412   :  { %v450_v42 = vsub.f32 %v1972_v22, %v449_v7 }
 0x413   :  { %1545 = vmatmul.mubr.msk.bf16.vlgmr.msra.gmra.mrb[4].mxu0 %vm179_vm2, %v235_v8 }
 0x414   :  { %v451_v9 = vmul.f32 1.442695, %v450_v42  ;;  %1555 = vmatpush3.bf16.msra.mxu0 %v353_v10  ;;  %1556 = vmatprep.mubr.msk.bf16.mxu0 %vm1750_vm1, %v1749_v15 }
 0x415   :  { %1566 = vmatprep.subr.bf16.mxu0 %v1749_v15 }
 0x416   :  { %1709 = vpow2.f32 %v451_v9 }
 0x418   :  { %v1708_v11 = vpop.eup %1707 }
 0x419   :  { %v559_v12 = vpop.xlane.xlu0 %558  ;;  %v343_v13 = vsel %vm179_vm2, %v1708_v11, 0.0  ;;  %v346_v14 = vpack.c.bf16 %v1708_v11, %v1708_v11 }
 0x41a   :  { %v560_v16 = vsub.f32 %v1976_v28, %v559_v12  ;;  %344 = vadd.xlane.f32.xlu0 %v343_v13 }
 0x41b   :  { %1557 = vmatmul.mubr.msk.bf16.vlgmr.msra.gmra.mrb[8].mxu0 %vm179_vm2, %v346_v14 }
 0x41c   :  { %v561_v18 = vmul.f32 1.442695, %v560_v16  ;;  %1567 = vmatpush3.bf16.msra.mxu0 %v463_v17  ;;  %1568 = vmatprep.mubr.msk.bf16.mxu0 %vm1750_vm1, %v1749_v15 }
 0x41d   :  { %1578 = vmatprep.subr.bf16.mxu0 %v1749_v15  ;;  %v568_v20 = vpop.permute.xlu0 %567 }
 0x41e   :  { %1711 = vpow2.f32 %v561_v18  ;;  %v573_v23 = vsel %vm241_vm3, %v568_v20, 0 }
 0x420   :  { %v1710_v19 = vpop.eup %1709 }
 0x421   :  { %v453_v21 = vsel %vm179_vm2, %v1710_v19, 0.0  ;;  %v456_v22 = vpack.c.bf16 %v1710_v19, %v1710_v19 }
 0x422   :  { %454 = vadd.xlane.f32.xlu0 %v453_v21 }
 0x423   :  { %1569 = vmatmul.mubr.msk.bf16.vlgmr.msra.gmra.mrb[12].mxu0 %vm179_vm2, %v456_v22 }
 0x424   :  { %1579 = vmatpush3.bf16.msra.mxu0 %v573_v23  ;;  %1580 = vmatprep.mubr.msk.bf16.mxu0 %vm1750_vm1, %v1749_v15 }
 0x425   :  { %1590 = vmatprep.subr.bf16.mxu0 %v1749_v15 }
 0x428   :  { %v1712_v24 = vpop.eup %1711 }
 0x429   :  { %v566_v26 = vpack.c.bf16 %v1712_v24, %v1712_v24  ;;  %v563_v53 = vsel %vm179_vm2, %v1712_v24, 0.0 }
 0x42b   :  { %1581 = vmatmul.mubr.msk.bf16.vlgmr.msra.gmra.mrb[16].mxu0 %vm179_vm2, %v566_v26 }
 0x42c   :  { %1591 = vmatpush3.bf16.msra.mxu0 %v703_v27  ;;  %1592 = vmatprep.mubr.msk.bf16.mxu0 %vm1750_vm1, %v1749_v15 }
 0x42d   :  { %1602 = vmatprep.subr.bf16.mxu0 %v1749_v15 }
 0x43e   :  { %v689_v28 = vpop.xlane.xlu1 %688 }
 0x43f   :  { %v690_v29 = vsub.f32 %v1983_v55, %v689_v28 }
 0x441   :  { %v691_v30 = vmul.f32 1.442695, %v690_v29 }
 0x442   :  { %v799_v33 = vpop.xlane.xlu1 %798 }
 0x443   :  { %1713 = vpow2.f32 %v691_v30  ;;  %v800_v34 = vsub.f32 %v1985_v56, %v799_v33 }
 0x445   :  { %v801_v35 = vmul.f32 1.442695, %v800_v34  ;;  %v1693_v34 = vld [vmem:[%s2148_s6] sm:$0xff]  }
 0x446   :  { %v808_v37 = vpop.permute.xlu1 %807  ;;  %1633 = vmatpush3.bf16.msra.mxu1 %v1693_v34 }
 0x447   :  { %1715 = vpow2.f32 %v801_v35  ;;  %v813_v43 = vsel %vm241_vm3, %v808_v37, 0  ;;  %1634 = vmatprep.subr.bf16.mxu1 %v1749_v15 }
 0x44d   :  { %v1714_v36 = vpop.eup %1713 }
 0x44e   :  { %v909_v38 = vpop.xlane.xlu0 %908  ;;  %v696_v39 = vpack.c.bf16 %v1714_v36, %v1714_v36 }
 0x44f   :  { %v910_v40 = vsub.f32 %v1991_v41, %v909_v38 }
 0x450   :  { %1593 = vmatmul.mubr.msk.bf16.vlgmr.msra.gmra.mrb[20].mxu0 %vm179_vm2, %v696_v39 }
 0x451   :  { %v1716_v44 = vpop.eup %1715  ;;  %v911_v45 = vmul.f32 1.442695, %v910_v40  ;;  %1603 = vmatpush3.bf16.msra.mxu0 %v813_v43  ;;  %1604 = vmatprep.mubr.msk.bf16.mxu0 %vm1750_vm1, %v1749_v15 }
 0x452   :  { %v803_v46 = vsel %vm179_vm2, %v1716_v44, 0.0  ;;  %1614 = vmatprep.subr.bf16.mxu0 %v1749_v15  ;;  %v918_v47 = vpop.permute.xlu0 %917  ;;  %v806_v48 = vpack.c.bf16 %v1716_v44, %v1716_v44 }
 0x453   :  { %1717 = vpow2.f32 %v911_v45  ;;  %804 = vadd.xlane.f32.xlu1 %v803_v46  ;;  %v923_v49 = vsel %vm241_vm3, %v918_v47, 0 }
 0x458   :  { %1605 = vmatmul.mubr.msk.bf16.vlgmr.msra.gmra.mrb[24].mxu0 %vm179_vm2, %v806_v48  ;;  %v1694_v48 = vld [vmem:[%s2148_s6 + $0x8] sm:$0xff]  }
 0x459   :  { %1615 = vmatpush3.bf16.msra.mxu0 %v923_v49  ;;  %1616 = vmatprep.mubr.msk.bf16.mxu0 %vm1750_vm1, %v1749_v15 }
 0x45a   :  { %1626 = vmatprep.subr.bf16.mxu0 %v1749_v15  ;;  %1635 = vmatpush3.bf16.msra.mxu1 %v1694_v48  ;;  %v1464_v48 = vld [vmem:[%s2151_s8] ss:$0 sm:$0xff] }
 0x45b   :  { %1648 = vmatprep.subr.bf16.mxu1 %v1749_v15 }
 0x45d   :  { %v1718_v50 = vpop.eup %1717 }
 0x45e   :  { %v913_v51 = vsel %vm179_vm2, %v1718_v50, 0.0  ;;  %v916_v52 = vpack.c.bf16 %v1718_v50, %v1718_v50 }
 0x45f   :  { %914 = vadd.xlane.f32.xlu0 %v913_v51 }
 0x460   :  { %1617 = vmatmul.mubr.msk.bf16.vlgmr.msra.gmra.mrb[28].mxu0 %vm179_vm2, %v916_v52 }
 0x461   :  { %1628 = vmatprep.mubr.msk.bf16.mxu0 %vm1750_vm1, %v1749_v15 }
 0x463   :  { %564 = vadd.xlane.f32.xlu0 %v563_v53 }
 0x467   :  { %233 = vadd.xlane.f32.xlu0 %v232_v54 }
 0x477   :  { %v1019_v55 = vpop.xlane.xlu1 %1018 }
 0x478   :  { %v1020_v56 = vsub.f32 %v1999_v60, %v1019_v55  ;;  %v693_v60 = vsel %vm179_vm2, %v1714_v36, 0.0 }
 0x47a   :  { %v1021_v57 = vmul.f32 1.442695, %v1020_v56 }
 0x47b   :  { %v1028_v58 = vpop.permute.xlu1 %1027 }
 0x47c   :  { %1719 = vpow2.f32 %v1021_v57  ;;  %v1033_v41 = vsel %vm241_vm3, %v1028_v58, 0 }
 0x47d   :  { %1627 = vmatpush3.bf16.msra.mxu0 %v1033_v41 }
 0x47e   :  { %1640 = vmatprep.subr.bf16.mxu0 %v1749_v15 }
 0x486   :  { %v1720_v59 = vpop.eup %1719 }
 0x487   :  { %v1023_v61 = vsel %vm179_vm2, %v1720_v59, 0.0  ;;  %v1026_v62 = vpack.c.bf16 %v1720_v59, %v1720_v59 }
 0x488   :  { %1024 = vadd.xlane.f32.xlu1 %v1023_v61 }
 0x489   :  { %1629 = vmatmul.mubr.msk.bf16.vlgmr.msra.gmra.mrb[32].mxu0 %vm179_vm2, %v1026_v62 }
 0x48a   :  { %1644 = vmatprep.mubr.msk.bf16.mxu0 %vm1750_vm1, %v1749_v15 }
 0x48c   :  { %694 = vadd.xlane.f32.xlu1 %v693_v60 }
 0x4a7   :  { %v345_v14 = vpop.xlane.xlu0 %344 }
 0x4a8   :  { %1721 = vrcp.f32 %v345_v14 }
 0x4af   :  { %v455_v17 = vpop.xlane.xlu0 %454 }
 0x4b2   :  { %v1722_v23 = vpop.eup %1721 }
 0x4e0   :  { %v805_v16 = vpop.xlane.xlu1 %804 }
 0x4e1   :  { %1723 = vrcp.f32 %v805_v16 }
 0x4e2   :  { %1725 = vrcp.f32 %v455_v17 }
 0x4e6   :  { %v2063_v63 = vpop.f32.mrb[4].mxu0 }
 0x4e7   :  { %v1546_v0 = vpop.f32.mrb[5].mxu0 }
 0x4e8   :  { %v282_v1 = vpop.f32.mrb[6].mxu0 }
 0x4e9   :  { %v1547_v2 = vpop.f32.mrb[7].mxu0 }
 0x4eb   :  { %v1724_v24 = vpop.eup %1723 }
 0x4ec   :  { %v915_v21 = vpop.xlane.xlu0 %914  ;;  %v1726_v35 = vpop.eup %1725 }
 0x4ed   :  { %1727 = vrcp.f32 %v915_v21 }
 0x4ee   :  { %v389_v3 = vpop.f32.mrb[8].mxu0 }
 0x4ef   :  { %v1558_v4 = vpop.f32.mrb[9].mxu0  ;;  %v396_v26 = vmul.f32 %v1722_v23, %v389_v3 }
 0x4f0   :  { %v392_v5 = vpop.f32.mrb[10].mxu0  ;;  %v565_v46 = vpop.xlane.xlu0 %564 }
 0x4f1   :  { %v1559_v6 = vpop.f32.mrb[11].mxu0  ;;  %1729 = vrcp.f32 %v565_v46 }
 0x4f4   :  { %v234_v58 = vpop.xlane.xlu0 %233 }
 0x4f6   :  { %v499_v7 = vpop.f32.mrb[12].mxu0 }
 0x4f7   :  { %v1570_v8 = vpop.f32.mrb[13].mxu0  ;;  %v1728_v36 = vpop.eup %1727  ;;  %v506_v38 = vmul.f32 %v1726_v35, %v499_v7 }
 0x4f8   :  { %v502_v42 = vpop.f32.mrb[14].mxu0 }
 0x4f9   :  { %v1571_v10 = vpop.f32.mrb[15].mxu0 }
 0x4fb   :  { %v1730_v49 = vpop.eup %1729 }
 0x4fe   :  { %v609_v9 = vpop.f32.mrb[16].mxu0 }
 0x4ff   :  { %v1582_v11 = vpop.f32.mrb[17].mxu0  ;;  %v616_v52 = vmul.f32 %v1730_v49, %v609_v9 }
 0x500   :  { %v612_v12 = vpop.f32.mrb[18].mxu0 }
 0x501   :  { %v1583_v13 = vpop.f32.mrb[19].mxu0 }
 0x515   :  { %v1025_v47 = vpop.xlane.xlu1 %1024 }
 0x516   :  { %1731 = vrcp.f32 %v1025_v47 }
 0x517   :  { %1733 = vrcp.f32 %v234_v58  ;;  %v1698_v58 = vld [vmem:[%s2153_s12 + $0x8] sm:$0xff]  }
 0x519   :  { %v695_v41 = vpop.xlane.xlu1 %694 }
 0x51a   :  { %1735 = vrcp.f32 %v695_v41  ;;  %v1699_v41 = vld [vmem:[%s2153_s12 + $0x10] sm:$0xff]  }
 0x520   :  { %v1732_v50 = vpop.eup %1731 }
 0x521   :  { %v1734_v61 = vpop.eup %1733 }
 0x522   :  { %v286_v5 = vmul.f32 %v1734_v61, %v2063_v63  ;;  %v1460_v63 = vld [vmem:[%s2149_s7] ss:$0 sm:$0xff] }
 0x523   :  { %v2065_v18 = vpop.f32.mrb[20].mxu0  ;;  %v1466_v61 = vld [vmem:[%s2154_s11] ss:$0 sm:$0xff] }
 0x524   :  { %v1594_v19 = vpop.f32.mrb[21].mxu0  ;;  %v1736_v60 = vpop.eup %1735 }
 0x525   :  { %v742_v20 = vpop.f32.mrb[22].mxu0  ;;  %v746_v4 = vmul.f32 %v1736_v60, %v2065_v18 }
 0x526   :  { %v1595_v22 = vpop.f32.mrb[23].mxu0 }
 0x52b   :  { %v849_v25 = vpop.f32.mrb[24].mxu0 }
 0x52c   :  { %v856_v27 = vmul.f32 %v1724_v24, %v849_v25  ;;  %v1606_v28 = vpop.f32.mrb[25].mxu0 }
 0x52d   :  { %v852_v29 = vpop.f32.mrb[26].mxu0 }
 0x52e   :  { %v1676_v30 = vpack.i.bf16 %v856_v27, %v396_v26  ;;  %v1607_v33 = vpop.f32.mrb[27].mxu0 }
 0x530   :  { %1677 = vrot.lane.b32.xlu0 %v1676_v30, %s1762_s30 }
 0x533   :  { %v959_v37 = vpop.f32.mrb[28].mxu0 }
 0x534   :  { %v966_v39 = vmul.f32 %v1728_v36, %v959_v37  ;;  %v1618_v40 = vpop.f32.mrb[29].mxu0  ;;  %v1696_v37 = vld [vmem:[%s2150_s10 + $0x8] sm:$0xff]  }
 0x535   :  { %v962_v43 = vpop.f32.mrb[30].mxu0 }
 0x536   :  { %v1681_v44 = vpack.i.bf16 %v966_v39, %v506_v38  ;;  %v1619_v45 = vpop.f32.mrb[31].mxu0 }
 0x538   :  { %1682 = vrot.lane.b32.xlu1 %v1681_v44, %s1763_s0 }
 0x55c   :  { %v1069_v51 = vpop.f32.mrb[32].mxu0 }
 0x55d   :  { %v1076_v53 = vmul.f32 %v1732_v50, %v1069_v51  ;;  %v1630_v54 = vpop.f32.mrb[33].mxu0 }
 0x55e   :  { %v1072_v55 = vpop.f32.mrb[34].mxu0 }
 0x55f   :  { %v1686_v56 = vpack.i.bf16 %v1076_v53, %v616_v52  ;;  %v1631_v57 = vpop.f32.mrb[35].mxu0  ;;  %v1465_v52 = vld [vmem:[%s2152_s9] ss:$0 sm:$0xff] }
 0x560   :  { %v1697_v57 = vld [vmem:[%s2153_s12] sm:$0xff]  }
 0x561   :  { %1687 = vrot.lane.b32.xlu1 %v1686_v56, %s1764_s18 }
 0x5a2   :  { %v1678_v59 = vpop.permute.xlu0 %1677 }
 0x5a3   :  { %v1680_v0 = vunpack.i.h.bf16 %v1678_v59  ;;  %v1679_v1 = vunpack.i.l.bf16 %v1678_v59  ;;  %v1700_v59 = vld [vmem:[%s2153_s12 + $0x18] sm:$0xff]  }
 0x5a5   :  { %v1089_v7 = vsel %vm179_vm2, %v746_v4, %v1680_v0  ;;  %v629_v8 = vsel %vm179_vm2, %v286_v5, %v1679_v1 }
 0x5aa   :  { %v1683_v62 = vpop.permute.xlu1 %1682 }
 0x5ab   :  { %v1685_v2 = vunpack.i.h.bf16 %v1683_v62  ;;  %v1684_v3 = vunpack.i.l.bf16 %v1683_v62 }
 0x5ad   :  { %v1090_v9 = vsel %vm630_vm4, %v1089_v7, %v1685_v2  ;;  %v631_v11 = vsel %vm630_vm4, %v629_v8, %v1684_v3 }
 0x5d3   :  { %v1688_v6 = vpop.permute.xlu1 %1687 }
 0x5d4   :  { %v1690_v42 = vunpack.i.h.bf16 %v1688_v6  ;;  %v1689_v10 = vunpack.i.l.bf16 %v1688_v6 }
 0x5d6   :  { %v1091_v12 = vsel %vm632_vm5, %v1090_v9, %v1690_v42  ;;  %v633_v13 = vsel %vm632_vm5, %v631_v11, %v1689_v10 }
 0x5d7   :  { %v1092_v14 = vpack.c.bf16 %v1091_v12, %v633_v13 }
 0x5d9   :  { %1637 = vmatmul.mubr.msk.bf16.vlgmr.msra.gmra.mrb[32].mxu1 %vm56_vm0, %v1092_v14 }
 0x5da   :  { %1656 = vmatprep.mubr.msk.bf16.mxu1 %vm1750_vm1, %v1749_v15  ;;  %1649 = vmatpush3.bf16.msra.mxu1 %v1697_v57 }
 0x5db   :  { %1650 = vmatprep.subr.bf16.mxu1 %v1749_v15 }
 0x5de   :  { %1651 = vmatpush3.bf16.msra.mxu1 %v1698_v58 }
 0x5df   :  { %1652 = vmatprep.subr.bf16.mxu1 %v1749_v15 }
 0x5e2   :  { %1653 = vmatpush3.bf16.msra.mxu1 %v1699_v41 }
 0x5e3   :  { %1654 = vmatprep.subr.bf16.mxu1 %v1749_v15 }
 0x5e6   :  { %1655 = vmatpush3.bf16.msra.mxu1 %v1700_v59 }
 0x6ac   :  { %v1153_v16 = vpop.f32.mrb[32].mxu1 }
 0x6ad   :  { %v1154_v17 = vadd.f32 %v1460_v63, %v1153_v16  ;;  %v1638_v18 = vpop.f32.mrb[33].mxu1 }
 0x6ae   :  { %v1156_v19 = vpop.f32.mrb[34].mxu1 }
 0x6af   :  { %v1157_v20 = vadd.f32 %v1460_v63, %v1156_v19  ;;  %v1639_v21 = vpop.f32.mrb[35].mxu1  ;;  %v1160_v22 = vadd.f32 %v1154_v17, %v1880_v31 }
 0x6b0   :  { %v1470_v21 = vld [vmem:[%s2155_s13] ss:$0 sm:$0xff] }
 0x6b1   :  { %v1162_v23 = vsel %vm56_vm0, %v1160_v22, 0.0  ;;  %v1161_v24 = vadd.f32 %v1157_v20, %v1882_v32  ;;  %v1695_v32 = vld [vmem:[%s2150_s10] sm:$0xff]  }
 0x6b2   :  { %1163 = vadd.xlane.f32.xlu1 %v1162_v23  ;;  %1641 = vmatpush3.bf16.msra.mxu0 %v1695_v32 }
 0x6b3   :  { %v1165_v25 = vsel %vm56_vm0, %v1161_v24, 0.0  ;;  %1642 = vmatprep.subr.bf16.mxu0 %v1749_v15 }
 0x6b4   :  { %1166 = vadd.xlane.f32.xlu0 %v1165_v25 }
 0x6b6   :  { %1643 = vmatpush3.bf16.msra.mxu0 %v1696_v37 }
 0x73f   :  { %v1164_v26 = vpop.xlane.xlu1 %1163 }
 0x740   :  { %v1168_v27 = vmul.f32 0.03125, %v1164_v26 }
 0x741   :  { %v1167_v28 = vpop.xlane.xlu0 %1166 }
 0x742   :  { %v1170_v29 = vsub.f32 %v1160_v22, %v1168_v27  ;;  %v1169_v30 = vmul.f32 0.03125, %v1167_v28 }
 0x744   :  { %v1171_v33 = vsub.f32 %v1161_v24, %v1169_v30  ;;  %v1172_v34 = vmul.f32 %v1170_v29, %v1170_v29 }
 0x746   :  { %v1174_v35 = vsel %vm56_vm0, %v1172_v34, 0.0  ;;  %v1173_v36 = vmul.f32 %v1171_v33, %v1171_v33 }
 0x747   :  { %1175 = vadd.xlane.f32.xlu0 %v1174_v35 }
 0x748   :  { %v1177_v31 = vsel %vm56_vm0, %v1173_v36, 0.0 }
 0x74b   :  { %1178 = vadd.xlane.f32.xlu0 %v1177_v31 }
 0x7d4   :  { %v1176_v38 = vpop.xlane.xlu0 %1175 }
 0x7d5   :  { %v1180_v39 = vmul.f32 0.03125, %v1176_v38 }
 0x7d7   :  { %v1182_v40 = vadd.f32 1e-12, %v1180_v39 }
 0x7d8   :  { %v1179_v43 = vpop.xlane.xlu0 %1178 }
 0x7d9   :  { %1737 = vrsqrt.f32 %v1182_v40  ;;  %v1181_v44 = vmul.f32 0.03125, %v1179_v43 }
 0x7db   :  { %v1183_v45 = vadd.f32 1e-12, %v1181_v44 }
 0x7dd   :  { %1739 = vrsqrt.f32 %v1183_v45 }
 0x7e3   :  { %v1738_v46 = vpop.eup %1737 }
 0x7e4   :  { %v1186_v47 = vmul.f32 %v1738_v46, %v1170_v29 }
 0x7e6   :  { %v1195_v50 = vmul.f32 %v1464_v48, %v1186_v47 }
 0x7e7   :  { %v1740_v49 = vpop.eup %1739 }
 0x7e8   :  { %v1187_v51 = vmul.f32 %v1740_v49, %v1171_v33  ;;  %v1204_v54 = vadd.f32 %v1465_v52, %v1195_v50 }
 0x7ea   :  { %v1196_v53 = vmul.f32 %v1464_v48, %v1187_v51  ;;  %v1476_v51 = vld [vmem:[%s2156_s14] ss:$0 sm:$0xff] }
 0x7ec   :  { %v1205_v55 = vadd.f32 %v1465_v52, %v1196_v53 }
 0x7ee   :  { %v1206_v56 = vpack.c.bf16 %v1205_v55, %v1204_v54 }
 0x7f0   :  { %1645 = vmatmul.mubr.msk.bf16.vlgmr.msra.gmra.mrb[36].mxu0 %vm56_vm0, %v1206_v56 }
 0x8c3   :  { %v1267_v62 = vpop.f32.mrb[36].mxu0 }
 0x8c4   :  { %v1268_v60 = vadd.f32 %v1466_v61, %v1267_v62  ;;  %v1646_v0 = vpop.f32.mrb[37].mxu0 }
 0x8c5   :  { %v1270_v1 = vpop.f32.mrb[38].mxu0 }
 0x8c6   :  { %v1276_v2 = vmul.f32 0.044715, %v1268_v60  ;;  %v1271_v3 = vadd.f32 %v1466_v61, %v1270_v1  ;;  %v1647_v4 = vpop.f32.mrb[39].mxu0  ;;  %v1274_v63 = vmul.f32 0.5, %v1268_v60 }
 0x8c8   :  { %v1278_v5 = vmul.f32 %v1276_v2, %v1268_v60  ;;  %v1277_v6 = vmul.f32 0.044715, %v1271_v3  ;;  %v1275_v16 = vmul.f32 0.5, %v1271_v3 }
 0x8ca   :  { %v1280_v7 = vmul.f32 %v1278_v5, %v1268_v60  ;;  %v1279_v8 = vmul.f32 %v1277_v6, %v1271_v3 }
 0x8cc   :  { %v1282_v42 = vadd.f32 %v1280_v7, %v1268_v60  ;;  %v1281_v10 = vmul.f32 %v1279_v8, %v1271_v3 }
 0x8ce   :  { %v1284_v9 = vmul.f32 0.7978846, %v1282_v42  ;;  %v1283_v15 = vadd.f32 %v1281_v10, %v1271_v3 }
 0x8d0   :  { %1741 = vtanh.f32 %v1284_v9  ;;  %v1285_v11 = vmul.f32 0.7978846, %v1283_v15 }
 0x8d2   :  { %1743 = vtanh.f32 %v1285_v11 }
 0x8da   :  { %v1742_v12 = vpop.eup %1741 }
 0x8db   :  { %v1288_v13 = vadd.f32 1.0, %v1742_v12 }
 0x8dc   :  { %v1744_v14 = vpop.eup %1743 }
 0x8dd   :  { %v1289_v17 = vadd.f32 1.0, %v1744_v14  ;;  %v1290_v18 = vmul.f32 %v1288_v13, %v1274_v63 }
 0x8df   :  { %v1291_v19 = vmul.f32 %v1289_v17, %v1275_v16 }
 0x8e1   :  { %v1292_v20 = vpack.c.bf16 %v1291_v19, %v1290_v18 }
 0x8e3   :  { %1657 = vmatmul.mubr.msk.bf16.vlgmr.msra.gmra.mrb[36].mxu1 %vm1332_vm6, %v1292_v20 }
 0x9b6   :  { %v1370_v22 = vpop.f32.mrb[36].mxu1 }
 0x9b7   :  { %v1371_v23 = vadd.f32 %v1470_v21, %v1370_v22  ;;  %v1658_v24 = vpop.f32.mrb[37].mxu1 }
 0x9b8   :  { %v1373_v25 = vpop.f32.mrb[38].mxu1 }
 0x9b9   :  { %v1374_v26 = vadd.f32 %v1470_v21, %v1373_v25  ;;  %v1659_v27 = vpop.f32.mrb[39].mxu1  ;;  %v1377_v28 = vadd.f32 %v1371_v23, %v1204_v54  ;;  %v1477_v54 = vld [vmem:[%s2157_s15] ss:$0 sm:$0xff] }
 0x9bb   :  { %v1379_v29 = vsel %vm56_vm0, %v1377_v28, 0.0  ;;  %v1378_v30 = vadd.f32 %v1374_v26, %v1205_v55 }
 0x9bc   :  { %1380 = vadd.xlane.f32.xlu1 %v1379_v29 }
 0x9bd   :  { %v1382_v33 = vsel %vm56_vm0, %v1378_v30, 0.0 }
 0x9be   :  { %1383 = vadd.xlane.f32.xlu0 %v1382_v33 }
 0xa49   :  { %v1381_v34 = vpop.xlane.xlu1 %1380 }
 0xa4a   :  { %v1385_v35 = vmul.f32 0.03125, %v1381_v34 }
 0xa4b   :  { %v1384_v36 = vpop.xlane.xlu0 %1383 }
 0xa4c   :  { %v1387_v31 = vsub.f32 %v1377_v28, %v1385_v35  ;;  %v1386_v32 = vmul.f32 0.03125, %v1384_v36 }
 0xa4e   :  { %v1388_v37 = vsub.f32 %v1378_v30, %v1386_v32  ;;  %v1389_v38 = vmul.f32 %v1387_v31, %v1387_v31 }
 0xa50   :  { %v1391_v39 = vsel %vm56_vm0, %v1389_v38, 0.0  ;;  %v1390_v40 = vmul.f32 %v1388_v37, %v1388_v37 }
 0xa51   :  { %1392 = vadd.xlane.f32.xlu1 %v1391_v39 }
 0xa52   :  { %v1394_v43 = vsel %vm56_vm0, %v1390_v40, 0.0 }
 0xa53   :  { %1395 = vadd.xlane.f32.xlu0 %v1394_v43 }
 0xade   :  { %v1393_v44 = vpop.xlane.xlu1 %1392 }
 0xadf   :  { %v1397_v45 = vmul.f32 0.03125, %v1393_v44 }
 0xae0   :  { %v1396_v46 = vpop.xlane.xlu0 %1395 }
 0xae1   :  { %v1399_v47 = vadd.f32 1e-12, %v1397_v45  ;;  %v1398_v48 = vmul.f32 0.03125, %v1396_v46 }
 0xae3   :  { %1745 = vrsqrt.f32 %v1399_v47  ;;  %v1400_v49 = vadd.f32 1e-12, %v1398_v48 }
 0xae5   :  { %1747 = vrsqrt.f32 %v1400_v49 }
 0xaed   :  { %v1746_v50 = vpop.eup %1745 }
 0xaee   :  { %v1403_v52 = vmul.f32 %v1746_v50, %v1387_v31 }
 0xaef   :  { %v1748_v53 = vpop.eup %1747 }
 0xaf0   :  { %v1412_v55 = vmul.f32 %v1476_v51, %v1403_v52  ;;  %v1404_v56 = vmul.f32 %v1748_v53, %v1388_v37 }
 0xaf2   :  { %v1421_v57 = vadd.f32 %v1477_v54, %v1412_v55  ;;  %v1413_v58 = vmul.f32 %v1476_v51, %v1404_v56 }
 0xaf4   :  { %v1480_v41 = vpack.c.bf16 %v1421_v57, %v1421_v57  ;;  %v1422_v59 = vadd.f32 %v1477_v54, %v1413_v58 }
 0xaf6   :  { %1432 = vst.msk [vmem:[%s2158_s16] sm:$0xf] %vm1431_vm7, %v1480_v41  ;;  %v1481_v61 = vpack.c.bf16 %v1422_v59, %v1422_v59 }
 0xaf8   :  { %1433 = vst.msk [vmem:[%s2158_s16 + $0x4] sm:$0xf] %vm1431_vm7, %v1481_v61 }

// kernel: textnet_forward.3
= control target key start
LH: loop header
LB: loop body
LE: loop exit
PB: predicated region body
PF: predicated region fallthrough
CT: control target
= control target key end

     0   :  { %v1708_v0 = vmov 0.0   ;;  %vm1709_vm0 = vmmov 0   ;;  %vm86_vm1 = vcmask 261120   ;;  %s1712_s27 = smov 80   ;;  %s1713_s28 = smov 88   ;;  %vm140_vm2 = vcmask 64512   ;;  %s2062_s2 = inlined_call_operand.vmem [shape: f32[1,32], index: 2, kind: input, shape index: {}]   ;;  %s2063_s3 = inlined_call_operand.vmem [shape: f32[1,32], index: 3, kind: input, shape index: {}]   ;;  %s2064_s4 = inlined_call_operand.vmem [shape: bf16[32,96], index: 4, kind: input, shape index: {}]   ;;  %s2065_s0 = inlined_call_operand.vmem [shape: bf16[16,32], index: 0, kind: input, shape index: {}]   ;;  %s2066_s5 = inlined_call_operand.vmem [shape: f32[1,96], index: 5, kind: input, shape index: {}]   ;;  %s2067_s1 = inlined_call_operand.vmem [shape: f32[2,8], index: 1, kind: input, shape index: {}]   ;;  %s2068_s6 = inlined_call_operand.vmem [shape: bf16[32,32], index: 6, kind: input, shape index: {}]   ;;  %s2069_s7 = inlined_call_operand.vmem [shape: f32[1,32], index: 7, kind: input, shape index: {}]   ;;  %s2070_s10 = inlined_call_operand.vmem [shape: bf16[32,64], index: 10, kind: input, shape index: {}]   ;;  %s2071_s8 = inlined_call_operand.vmem [shape: f32[1,32], index: 8, kind: input, shape index: {}]   ;;  %s2072_s9 = inlined_call_operand.vmem [shape: f32[1,32], index: 9, kind: input, shape index: {}]   ;;  %s2073_s12 = inlined_call_operand.vmem [shape: bf16[64,32], index: 12, kind: input, shape index: {}]   ;;  %s2074_s11 = inlined_call_operand.vmem [shape: f32[1,64], index: 11, kind: input, shape index: {}]   ;;  %s2075_s13 = inlined_call_operand.vmem [shape: f32[1,32], index: 13, kind: input, shape index: {}]   ;;  %s2076_s14 = inlined_call_operand.vmem [shape: f32[1,32], index: 14, kind: input, shape index: {}]   ;;  %s2077_s15 = inlined_call_operand.vmem [shape: f32[1,32], index: 15, kind: input, shape index: {}]   ;;  %s2078_s16 = inlined_call_operand.vmem [shape: bf16[16,32], index: 16, kind: output, shape index: {}]  }
   0x1   :  { %1489 = vmatprep.subr.bf16.mxu0 %v1708_v0  ;;  %v1652_v1 = vld [vmem:[%s2064_s4] sm:$0xff]   ;;  %1493 = vmatprep.mubr.msk.bf16.mxu0 %vm1709_vm0, %v1708_v0  ;;  %v1653_v2 = vld [vmem:[%s2064_s4 + $0x8] sm:$0xff]   ;;  %s1711_s4 = smov 96   ;;  %s1715_s29 = smov 112   ;;  %vm202_vm3 = vcmask 1043456   ;;  %v133_v37 = vlaneseq  ;;  %vm591_vm4 = vcmask 130048  }
   0x2   :  { %1497 = vmatprep.subr.bf16.mxu1 %v1708_v0  ;;  %1499 = vmatprep.mubr.msk.bf16.mxu1 %vm1709_vm0, %v1708_v0  ;;  %v1824_v3 = vld [vmem:[%s2065_s0] sm:$0xff]   ;;  %s1710_s0 = smov 120   ;;  %s1716_s30 = smov 104   ;;  %vm593_vm5 = vcmask 195584   ;;  %vm1294_vm6 = vcmask 523264   ;;  %vm1393_vm7 = vcmask 257024  }
   0x3   :  { %1490 = vmatpush3.bf16.msra.mxu0 %v1652_v1  ;;  %v1400_v4 = vld [vmem:[%s2066_s5] ss:$0 sm:$0xff]  ;;  %s1714_s5 = smov 72   ;;  %s1717_s2 = smov 56   ;;  %v134_v38 = vshrl.u32 %v133_v37, 7 }
   0x4   :  { %1491 = vmatprep.subr.bf16.mxu0 %v1708_v0  ;;  %s1718_s17 = smov 64   ;;  %v132_v40 = vld [vmem:[%s2067_s1] sm:$0x3]  ;;  %s1719_s1 = smov 48  }
   0x5   :  { %v135_v39 = vsub.s32 0, %v134_v38  ;;  %s1720_s19 = smov 40   ;;  %s1721_s22 = smov 8  }
   0x6   :  { %s1722_s25 = smov 16   ;;  %s1723_s26 = smov 24  }
   0x7   :  { %1492 = vmatpush3.bf16.msra.mxu0 %v1653_v2  ;;  %v136_v41 = vrot.slane %v132_v40, %v135_v39 }
   0x8   :  { %1503 = vmatprep.subr.bf16.mxu0 %v1708_v0 }
   0xa   :  { %1494 = vmatmul.mubr.msk.bf16.vlgmr.msra.gmra.mrb[0].mxu0 %vm86_vm1, %v1824_v3 }
   0xb   :  { %1505 = vmatprep.mubr.msk.bf16.mxu0 %vm1709_vm0, %v1708_v0 }
  0xdd   :  { %v124_v5 = vpop.f32.mrb[0].mxu0 }
  0xde   :  { %v1495_v6 = vpop.f32.mrb[1].mxu0  ;;  %v125_v8 = vadd.f32 %v1400_v4, %v124_v5 }
  0xdf   :  { %v127_v7 = vpop.f32.mrb[2].mxu0 }
  0xe0   :  { %v128_v9 = vadd.f32 %v1400_v4, %v127_v7  ;;  %v1496_v10 = vpop.f32.mrb[3].mxu0 }
  0xe2   :  { %v1835_v11 = vpack.c.bf16 %v128_v9, %v125_v8 }
  0xe4   :  { %248 = vrot.lane.b32.xlu1 %v1835_v11, %s1710_s0  ;;  %138 = vrot.lane.b32.xlu0 %v1835_v11, %s1711_s4  ;;  %v1844_v12 = vrot.slane %v1835_v11, 4 }
  0xe8   :  { %360 = vrot.lane.b32.xlu1 %v1835_v11, %s1712_s27  ;;  %250 = vrot.lane.b32.xlu0 %v1835_v11, %s1713_s28 }
  0xec   :  { %470 = vrot.lane.b32.xlu1 %v1835_v11, %s1714_s5  ;;  %358 = vrot.lane.b32.xlu0 %v1835_v11, %s1715_s29 }
  0xf0   :  { %468 = vrot.lane.b32.xlu0 %v1835_v11, %s1716_s30  ;;  %600 = vrot.lane.b32.xlu1 %v1844_v12, %s1711_s4 }
  0xf4   :  { %710 = vrot.lane.b32.xlu0 %v1844_v12, %s1713_s28  ;;  %708 = vrot.lane.b32.xlu1 %v1844_v12, %s1710_s0 }
  0xf8   :  { %820 = vrot.lane.b32.xlu0 %v1844_v12, %s1712_s27  ;;  %818 = vrot.lane.b32.xlu1 %v1844_v12, %s1715_s29 }
  0xfc   :  { %930 = vrot.lane.b32.xlu0 %v1844_v12, %s1714_s5  ;;  %928 = vrot.lane.b32.xlu1 %v1844_v12, %s1716_s30 }
 0x100   :  { %308 = vrot.lane.b32.xlu0 %v1835_v11, %s1717_s2  ;;  %197 = vrot.lane.b32.xlu1 %v1835_v11, %s1718_s17 }
 0x156   :  { %v249_v13 = vpop.permute.xlu1 %248  ;;  %v139_v14 = vpop.permute.xlu0 %138 }
 0x157   :  { %v145_v15 = vsel %vm140_vm2, %v139_v14, 0 }
 0x158   :  { %1498 = vmatpush3.bf16.xpose.msra.mxu1 %v145_v15  ;;  %v597_v15 = vsub.s32 1, %v134_v38 }
 0x159   :  { %1509 = vmatprep.subr.bf16.mxu1 %v1708_v0 }
 0x15a   :  { %v361_v16 = vpop.permute.xlu1 %360  ;;  %v251_v17 = vpop.permute.xlu0 %250 }
 0x15b   :  { %v256_v19 = vsel %vm140_vm2, %v251_v17, 0  ;;  %v366_v22 = vsel %vm140_vm2, %v361_v16, 0  ;;  %v598_v17 = vrot.slane %v132_v40, %v597_v15 }
 0x15e   :  { %v471_v18 = vpop.permute.xlu1 %470  ;;  %v359_v24 = vpop.permute.xlu0 %358 }
 0x15f   :  { %1500 = vmatmul.mubr.msk.bf16.vlgmr.msra.gmra.mrb[0].mxu1 %vm140_vm2, %v1835_v11  ;;  %v476_v26 = vsel %vm140_vm2, %v471_v18, 0 }
 0x160   :  { %1510 = vmatpush3.bf16.xpose.msra.mxu1 %v256_v19  ;;  %1511 = vmatprep.mubr.msk.bf16.mxu1 %vm1709_vm0, %v1708_v0 }
 0x161   :  { %1521 = vmatprep.subr.bf16.mxu1 %v1708_v0 }
 0x162   :  { %v601_v20 = vpop.permute.xlu1 %600  ;;  %v469_v29 = vpop.permute.xlu0 %468 }
 0x163   :  { %v606_v30 = vsel %vm140_vm2, %v601_v20, 0 }
 0x166   :  { %v709_v21 = vpop.permute.xlu1 %708  ;;  %v711_v31 = vpop.permute.xlu0 %710 }
 0x167   :  { %1512 = vmatmul.mubr.msk.bf16.vlgmr.msra.gmra.mrb[4].mxu1 %vm140_vm2, %v249_v13  ;;  %v716_v32 = vsel %vm140_vm2, %v711_v31, 0 }
 0x168   :  { %1522 = vmatpush3.bf16.xpose.msra.mxu1 %v366_v22  ;;  %1523 = vmatprep.mubr.msk.bf16.mxu1 %vm1709_vm0, %v1708_v0 }
 0x169   :  { %1533 = vmatprep.subr.bf16.mxu1 %v1708_v0 }
 0x16a   :  { %v819_v23 = vpop.permute.xlu1 %818  ;;  %v821_v33 = vpop.permute.xlu0 %820 }
 0x16b   :  { %v826_v34 = vsel %vm140_vm2, %v821_v33, 0 }
 0x16e   :  { %v929_v25 = vpop.permute.xlu1 %928  ;;  %v931_v35 = vpop.permute.xlu0 %930 }
 0x16f   :  { %1524 = vmatmul.mubr.msk.bf16.vlgmr.msra.gmra.mrb[8].mxu1 %vm140_vm2, %v359_v24  ;;  %v936_v36 = vsel %vm140_vm2, %v931_v35, 0 }
 0x170   :  { %1534 = vmatpush3.bf16.xpose.msra.mxu1 %v476_v26  ;;  %1535 = vmatprep.mubr.msk.bf16.mxu1 %vm1709_vm0, %v1708_v0 }
 0x171   :  { %1545 = vmatprep.subr.bf16.mxu1 %v1708_v0 }
 0x172   :  { %v198_v27 = vpop.permute.xlu1 %197  ;;  %v309_v31 = vpop.permute.xlu0 %308 }
 0x173   :  { %v204_v28 = vsel %vm202_vm3, %v198_v27, 0  ;;  %v314_v40 = vsel %vm202_vm3, %v309_v31, 0 }
 0x174   :  { %1504 = vmatpush3.bf16.msra.mxu0 %v204_v28 }
 0x175   :  { %1515 = vmatprep.subr.bf16.mxu0 %v1708_v0 }
 0x177   :  { %1536 = vmatmul.mubr.msk.bf16.vlgmr.msra.gmra.mrb[12].mxu1 %vm140_vm2, %v469_v29 }
 0x178   :  { %1546 = vmatpush3.bf16.xpose.msra.mxu1 %v606_v30  ;;  %1547 = vmatprep.mubr.msk.bf16.mxu1 %vm1709_vm0, %v1708_v0 }
 0x179   :  { %1557 = vmatprep.subr.bf16.mxu1 %v1708_v0 }
 0x17f   :  { %1548 = vmatmul.mubr.msk.bf16.vlgmr.msra.gmra.mrb[16].mxu1 %vm140_vm2, %v1844_v12 }
 0x180   :  { %1558 = vmatpush3.bf16.xpose.msra.mxu1 %v716_v32  ;;  %1559 = vmatprep.mubr.msk.bf16.mxu1 %vm1709_vm0, %v1708_v0 }
 0x181   :  { %1569 = vmatprep.subr.bf16.mxu1 %v1708_v0 }
 0x187   :  { %1560 = vmatmul.mubr.msk.bf16.vlgmr.msra.gmra.mrb[20].mxu1 %vm140_vm2, %v709_v21 }
 0x188   :  { %1570 = vmatpush3.bf16.xpose.msra.mxu1 %v826_v34  ;;  %1571 = vmatprep.mubr.msk.bf16.mxu1 %vm1709_vm0, %v1708_v0 }
 0x189   :  { %1581 = vmatprep.subr.bf16.mxu1 %v1708_v0 }
 0x18f   :  { %1572 = vmatmul.mubr.msk.bf16.vlgmr.msra.gmra.mrb[24].mxu1 %vm140_vm2, %v819_v23 }
 0x190   :  { %1582 = vmatpush3.bf16.xpose.msra.mxu1 %v936_v36  ;;  %1583 = vmatprep.mubr.msk.bf16.mxu1 %vm1709_vm0, %v1708_v0 }
 0x191   :  { %1593 = vmatprep.subr.bf16.mxu1 %v1708_v0 }
 0x197   :  { %1584 = vmatmul.mubr.msk.bf16.vlgmr.msra.gmra.mrb[28].mxu1 %vm140_vm2, %v929_v25 }
 0x198   :  { %1597 = vmatprep.mubr.msk.bf16.mxu1 %vm1709_vm0, %v1708_v0 }
 0x232   :  { %v181_v42 = vpop.f32.mrb[0].mxu1 }
 0x233   :  { %v1905_v43 = vadd.f32 %v181_v42, %v136_v41  ;;  %v1501_v44 = vpop.f32.mrb[1].mxu1 }
 0x234   :  { %v184_v45 = vpop.f32.mrb[2].mxu1 }
 0x235   :  { %v1502_v46 = vpop.f32.mrb[3].mxu1  ;;  %v187_v47 = vsel %vm140_vm2, %v1905_v43, -inf }
 0x236   :  { %188 = vmax.xlane.f32.xlu0 %v187_v47 }
 0x23a   :  { %v292_v48 = vpop.f32.mrb[4].mxu1 }
 0x23b   :  { %v1909_v49 = vadd.f32 %v292_v48, %v136_v41  ;;  %v1513_v50 = vpop.f32.mrb[5].mxu1 }
 0x23c   :  { %v295_v51 = vpop.f32.mrb[6].mxu1 }
 0x23d   :  { %v1514_v52 = vpop.f32.mrb[7].mxu1  ;;  %v298_v53 = vsel %vm140_vm2, %v1909_v49, -inf }
 0x23e   :  { %299 = vmax.xlane.f32.xlu1 %v298_v53 }
 0x242   :  { %v402_v54 = vpop.f32.mrb[8].mxu1 }
 0x243   :  { %v1525_v55 = vpop.f32.mrb[9].mxu1  ;;  %v403_v14 = vadd.f32 %v402_v54, %v136_v41 }
 0x244   :  { %v405_v56 = vpop.f32.mrb[10].mxu1 }
 0x245   :  { %v1526_v57 = vpop.f32.mrb[11].mxu1  ;;  %v408_v19 = vsel %vm140_vm2, %v403_v14, -inf }
 0x24a   :  { %v512_v58 = vpop.f32.mrb[12].mxu1 }
 0x24b   :  { %v1537_v59 = vpop.f32.mrb[13].mxu1  ;;  %v513_v16 = vadd.f32 %v512_v58, %v136_v41 }
 0x24c   :  { %v515_v60 = vpop.f32.mrb[14].mxu1  ;;  %418 = vrot.lane.b32.xlu0 %v1835_v11, %s1719_s1 }
 0x24d   :  { %v1538_v61 = vpop.f32.mrb[15].mxu1  ;;  %v518_v24 = vsel %vm140_vm2, %v513_v16, -inf }
 0x24f   :  { %528 = vrot.lane.b32.xlu1 %v1835_v11, %s1720_s19 }
 0x252   :  { %v642_v62 = vpop.f32.mrb[16].mxu1 }
 0x253   :  { %v1549_v63 = vpop.f32.mrb[17].mxu1  ;;  %v643_v22 = vadd.f32 %v642_v62, %v598_v17 }
 0x254   :  { %v645_v1 = vpop.f32.mrb[18].mxu1 }
 0x255   :  { %v1550_v2 = vpop.f32.mrb[19].mxu1  ;;  %v648_v26 = vsel %vm140_vm2, %v643_v22, -inf }
 0x25a   :  { %v752_v4 = vpop.f32.mrb[20].mxu1 }
 0x25b   :  { %v1561_v5 = vpop.f32.mrb[21].mxu1  ;;  %v753_v23 = vadd.f32 %v752_v4, %v598_v17 }
 0x25c   :  { %v755_v6 = vpop.f32.mrb[22].mxu1 }
 0x25d   :  { %v1562_v7 = vpop.f32.mrb[23].mxu1  ;;  %v758_v27 = vsel %vm140_vm2, %v753_v23, -inf }
 0x262   :  { %v862_v8 = vpop.f32.mrb[24].mxu1 }
 0x263   :  { %v1573_v9 = vpop.f32.mrb[25].mxu1  ;;  %v863_v25 = vadd.f32 %v862_v8, %v598_v17 }
 0x264   :  { %v865_v10 = vpop.f32.mrb[26].mxu1 }
 0x265   :  { %v1574_v13 = vpop.f32.mrb[27].mxu1  ;;  %v868_v29 = vsel %vm140_vm2, %v863_v25, -inf }
 0x26a   :  { %v972_v18 = vpop.f32.mrb[28].mxu1 }
 0x26b   :  { %409 = vmax.xlane.f32.xlu0 %v408_v19  ;;  %v1585_v11 = vpop.f32.mrb[29].mxu1  ;;  %v1921_v28 = vadd.f32 %v972_v18, %v598_v17 }
 0x26c   :  { %v975_v20 = vpop.f32.mrb[30].mxu1 }
 0x26d   :  { %v1586_v21 = vpop.f32.mrb[31].mxu1  ;;  %v978_v30 = vsel %vm140_vm2, %v1921_v28, -inf }
 0x26f   :  { %519 = vmax.xlane.f32.xlu0 %v518_v24 }
 0x273   :  { %649 = vmax.xlane.f32.xlu0 %v648_v26  ;;  %759 = vmax.xlane.f32.xlu1 %v758_v27 }
 0x277   :  { %869 = vmax.xlane.f32.xlu0 %v868_v29 }
 0x27b   :  { %979 = vmax.xlane.f32.xlu0 %v978_v30 }
 0x284   :  { %768 = vrot.lane.b32.xlu1 %v1844_v12, %s1717_s2 }
 0x288   :  { %878 = vrot.lane.b32.xlu1 %v1844_v12, %s1719_s1 }
 0x28c   :  { %988 = vrot.lane.b32.xlu1 %v1844_v12, %s1720_s19 }
 0x291   :  { %658 = vrot.lane.b32.xlu0 %v1844_v12, %s1718_s17 }
 0x2c3   :  { %v189_v32 = vpop.xlane.xlu0 %188 }
 0x2c4   :  { %v190_v33 = vsub.f32 %v1905_v43, %v189_v32 }
 0x2c6   :  { %v191_v34 = vmul.f32 1.442695, %v190_v33 }
 0x2c7   :  { %v419_v41 = vpop.permute.xlu0 %418 }
 0x2c8   :  { %1664 = vpow2.f32 %v191_v34  ;;  %v424_v44 = vsel %vm202_vm3, %v419_v41, 0 }
 0x2cb   :  { %v300_v35 = vpop.xlane.xlu1 %299 }
 0x2cc   :  { %v301_v36 = vsub.f32 %v1909_v49, %v300_v35 }
 0x2ce   :  { %v302_v37 = vmul.f32 1.442695, %v301_v36 }
 0x2cf   :  { %v529_v48 = vpop.permute.xlu1 %528 }
 0x2d0   :  { %1666 = vpow2.f32 %v302_v37  ;;  %v534_v4 = vsel %vm202_vm3, %v529_v48, 0 }
 0x2d2   :  { %v1665_v38 = vpop.eup %1664 }
 0x2d3   :  { %v196_v39 = vpack.c.bf16 %v1665_v38, %v1665_v38  ;;  %v193_v10 = vsel %vm140_vm2, %v1665_v38, 0.0 }
 0x2d5   :  { %1506 = vmatmul.mubr.msk.bf16.vlgmr.msra.gmra.mrb[4].mxu0 %vm140_vm2, %v196_v39 }
 0x2d6   :  { %1516 = vmatpush3.bf16.msra.mxu0 %v314_v40  ;;  %1517 = vmatprep.mubr.msk.bf16.mxu0 %vm1709_vm0, %v1708_v0 }
 0x2d7   :  { %1527 = vmatprep.subr.bf16.mxu0 %v1708_v0 }
 0x2da   :  { %v1667_v12 = vpop.eup %1666 }
 0x2db   :  { %v304_v42 = vsel %vm140_vm2, %v1667_v12, 0.0  ;;  %v307_v43 = vpack.c.bf16 %v1667_v12, %v1667_v12 }
 0x2dc   :  { %305 = vadd.xlane.f32.xlu1 %v304_v42 }
 0x2dd   :  { %1518 = vmatmul.mubr.msk.bf16.vlgmr.msra.gmra.mrb[8].mxu0 %vm140_vm2, %v307_v43 }
 0x2de   :  { %1528 = vmatpush3.bf16.msra.mxu0 %v424_v44  ;;  %1529 = vmatprep.mubr.msk.bf16.mxu0 %vm1709_vm0, %v1708_v0 }
 0x2df   :  { %1539 = vmatprep.subr.bf16.mxu0 %v1708_v0 }
 0x2f8   :  { %v410_v45 = vpop.xlane.xlu0 %409 }
 0x2f9   :  { %v411_v46 = vsub.f32 %v403_v14, %v410_v45 }
 0x2fb   :  { %v412_v47 = vmul.f32 1.442695, %v411_v46 }
 0x2fc   :  { %v520_v49 = vpop.xlane.xlu0 %519 }
 0x2fd   :  { %1668 = vpow2.f32 %v412_v47  ;;  %v521_v50 = vsub.f32 %v513_v16, %v520_v49 }
 0x2ff   :  { %v522_v51 = vmul.f32 1.442695, %v521_v50 }
 0x300   :  { %v650_v52 = vpop.xlane.xlu0 %649  ;;  %v760_v53 = vpop.xlane.xlu1 %759 }
 0x301   :  { %1670 = vpow2.f32 %v522_v51  ;;  %v761_v54 = vsub.f32 %v753_v23, %v760_v53  ;;  %v651_v55 = vsub.f32 %v643_v22, %v650_v52 }
 0x303   :  { %v762_v56 = vmul.f32 1.442695, %v761_v54  ;;  %v652_v60 = vmul.f32 1.442695, %v651_v55 }
 0x304   :  { %v870_v57 = vpop.xlane.xlu0 %869  ;;  %v769_v11 = vpop.permute.xlu1 %768 }
 0x305   :  { %v871_v58 = vsub.f32 %v863_v25, %v870_v57  ;;  %1672 = vpow2.f32 %v762_v56  ;;  %v774_v22 = vsel %vm202_vm3, %v769_v11, 0 }
 0x307   :  { %v1669_v59 = vpop.eup %1668  ;;  %v872_v61 = vmul.f32 1.442695, %v871_v58 }
 0x308   :  { %v980_v62 = vpop.xlane.xlu0 %979  ;;  %v414_v63 = vsel %vm140_vm2, %v1669_v59, 0.0  ;;  %v417_v1 = vpack.c.bf16 %v1669_v59, %v1669_v59  ;;  %v879_v24 = vpop.permute.xlu1 %878 }
 0x309   :  { %1674 = vpow2.f32 %v872_v61  ;;  %v981_v2 = vsub.f32 %v1921_v28, %v980_v62  ;;  %415 = vadd.xlane.f32.xlu1 %v414_v63  ;;  %v884_v26 = vsel %vm202_vm3, %v879_v24, 0 }
 0x30a   :  { %1530 = vmatmul.mubr.msk.bf16.vlgmr.msra.gmra.mrb[12].mxu0 %vm140_vm2, %v417_v1  ;;  %1676 = vpow2.f32 %v652_v60 }
 0x30b   :  { %v1671_v5 = vpop.eup %1670  ;;  %v982_v6 = vmul.f32 1.442695, %v981_v2  ;;  %1540 = vmatpush3.bf16.msra.mxu0 %v534_v4  ;;  %1541 = vmatprep.mubr.msk.bf16.mxu0 %vm1709_vm0, %v1708_v0  ;;  %v1655_v2 = vld [vmem:[%s2068_s6] sm:$0xff]  }
 0x30c   :  { %v524_v7 = vsel %vm140_vm2, %v1671_v5, 0.0  ;;  %1551 = vmatprep.subr.bf16.mxu0 %v1708_v0  ;;  %v659_v8 = vpop.permute.xlu0 %658  ;;  %v527_v13 = vpack.c.bf16 %v1671_v5, %v1671_v5  ;;  %v989_v27 = vpop.permute.xlu1 %988  ;;  %1594 = vmatpush3.bf16.msra.mxu1 %v1655_v2 }
 0x30d   :  { %1678 = vpow2.f32 %v982_v6  ;;  %525 = vadd.xlane.f32.xlu1 %v524_v7  ;;  %v664_v15 = vsel %vm202_vm3, %v659_v8, 0  ;;  %v994_v29 = vsel %vm202_vm3, %v989_v27, 0  ;;  %1595 = vmatprep.subr.bf16.mxu1 %v1708_v0 }
 0x30f   :  { %v1673_v9 = vpop.eup %1672 }
 0x310   :  { %v764_v14 = vsel %vm140_vm2, %v1673_v9, 0.0  ;;  %v767_v25 = vpack.c.bf16 %v1673_v9, %v1673_v9 }
 0x311   :  { %194 = vadd.xlane.f32.xlu1 %v193_v10  ;;  %765 = vadd.xlane.f32.xlu0 %v764_v14  ;;  %v1656_v10 = vld [vmem:[%s2068_s6 + $0x8] sm:$0xff]  }
 0x312   :  { %1542 = vmatmul.mubr.msk.bf16.vlgmr.msra.gmra.mrb[16].mxu0 %vm140_vm2, %v527_v13  ;;  %1596 = vmatpush3.bf16.msra.mxu1 %v1656_v10 }
 0x313   :  { %v1675_v16 = vpop.eup %1674  ;;  %1552 = vmatpush3.bf16.msra.mxu0 %v664_v15  ;;  %1553 = vmatprep.mubr.msk.bf16.mxu0 %vm1709_vm0, %v1708_v0 }
 0x314   :  { %v874_v17 = vsel %vm140_vm2, %v1675_v16, 0.0  ;;  %1563 = vmatprep.subr.bf16.mxu0 %v1708_v0  ;;  %v1677_v18 = vpop.eup %1676  ;;  %v877_v28 = vpack.c.bf16 %v1675_v16, %v1675_v16  ;;  %1609 = vmatprep.subr.bf16.mxu1 %v1708_v0 }
 0x315   :  { %875 = vadd.xlane.f32.xlu0 %v874_v17  ;;  %v657_v21 = vpack.c.bf16 %v1677_v18, %v1677_v18  ;;  %v654_v23 = vsel %vm140_vm2, %v1677_v18, 0.0 }
 0x317   :  { %v1679_v19 = vpop.eup %1678 }
 0x318   :  { %v984_v20 = vsel %vm140_vm2, %v1679_v19, 0.0  ;;  %v987_v30 = vpack.c.bf16 %v1679_v19, %v1679_v19 }
 0x319   :  { %985 = vadd.xlane.f32.xlu0 %v984_v20 }
 0x31a   :  { %1554 = vmatmul.mubr.msk.bf16.vlgmr.msra.gmra.mrb[20].mxu0 %vm140_vm2, %v657_v21 }
 0x31b   :  { %1564 = vmatpush3.bf16.msra.mxu0 %v774_v22  ;;  %1565 = vmatprep.mubr.msk.bf16.mxu0 %vm1709_vm0, %v1708_v0 }
 0x31c   :  { %1575 = vmatprep.subr.bf16.mxu0 %v1708_v0 }
 0x31d   :  { %655 = vadd.xlane.f32.xlu0 %v654_v23 }
 0x322   :  { %1566 = vmatmul.mubr.msk.bf16.vlgmr.msra.gmra.mrb[24].mxu0 %vm140_vm2, %v767_v25 }
 0x323   :  { %1576 = vmatpush3.bf16.msra.mxu0 %v884_v26  ;;  %1577 = vmatprep.mubr.msk.bf16.mxu0 %vm1709_vm0, %v1708_v0 }
 0x324   :  { %1587 = vmatprep.subr.bf16.mxu0 %v1708_v0 }
 0x32a   :  { %1578 = vmatmul.mubr.msk.bf16.vlgmr.msra.gmra.mrb[28].mxu0 %vm140_vm2, %v877_v28 }
 0x32b   :  { %1588 = vmatpush3.bf16.msra.mxu0 %v994_v29  ;;  %1589 = vmatprep.mubr.msk.bf16.mxu0 %vm1709_vm0, %v1708_v0 }
 0x32c   :  { %1601 = vmatprep.subr.bf16.mxu0 %v1708_v0 }
 0x332   :  { %1590 = vmatmul.mubr.msk.bf16.vlgmr.msra.gmra.mrb[32].mxu0 %vm140_vm2, %v987_v30 }
 0x333   :  { %1605 = vmatprep.mubr.msk.bf16.mxu0 %vm1709_vm0, %v1708_v0 }
 0x369   :  { %v306_v44 = vpop.xlane.xlu1 %305 }
 0x36a   :  { %1680 = vrcp.f32 %v306_v44 }
 0x374   :  { %v1681_v54 = vpop.eup %1680 }
 0x396   :  { %v416_v50 = vpop.xlane.xlu1 %415 }
 0x39a   :  { %v526_v60 = vpop.xlane.xlu1 %525 }
 0x39e   :  { %v766_v46 = vpop.xlane.xlu0 %765  ;;  %v195_v24 = vpop.xlane.xlu1 %194 }
 0x39f   :  { %1682 = vrcp.f32 %v766_v46  ;;  %v56_v46 = vunpack.c.l.bf16 %v1824_v3 }
 0x3a0   :  { %1684 = vrcp.f32 %v416_v50  ;;  %v57_v50 = vunpack.c.h.bf16 %v1824_v3 }
 0x3a2   :  { %v876_v52 = vpop.xlane.xlu0 %875 }
 0x3a3   :  { %1686 = vrcp.f32 %v876_v52 }
 0x3a4   :  { %1688 = vrcp.f32 %v526_v60 }
 0x3a6   :  { %v986_v62 = vpop.xlane.xlu0 %985 }
 0x3a7   :  { %1690 = vrcp.f32 %v986_v62 }
 0x3a8   :  { %v1983_v31 = vpop.f32.mrb[4].mxu0  ;;  %1692 = vrcp.f32 %v195_v24 }
 0x3a9   :  { %v1507_v32 = vpop.f32.mrb[5].mxu0  ;;  %v1683_v55 = vpop.eup %1682 }
 0x3aa   :  { %v243_v33 = vpop.f32.mrb[6].mxu0  ;;  %v1685_v4 = vpop.eup %1684 }
 0x3ab   :  { %v1508_v34 = vpop.f32.mrb[7].mxu0  ;;  %v656_v25 = vpop.xlane.xlu0 %655 }
 0x3ac   :  { %1694 = vrcp.f32 %v656_v25  ;;  %v1659_v25 = vld [vmem:[%s2073_s12] sm:$0xff]  }
 0x3ad   :  { %v1687_v5 = vpop.eup %1686 }
 0x3ae   :  { %v1689_v16 = vpop.eup %1688 }
 0x3b0   :  { %v350_v35 = vpop.f32.mrb[8].mxu0 }
 0x3b1   :  { %v1519_v36 = vpop.f32.mrb[9].mxu0  ;;  %v357_v57 = vmul.f32 %v1681_v54, %v350_v35  ;;  %v1691_v17 = vpop.eup %1690 }
 0x3b2   :  { %v353_v37 = vpop.f32.mrb[10].mxu0  ;;  %v1693_v28 = vpop.eup %1692 }
 0x3b3   :  { %v1520_v38 = vpop.f32.mrb[11].mxu0  ;;  %v247_v35 = vmul.f32 %v1693_v28, %v1983_v31  ;;  %v1421_v31 = vld [vmem:[%s2069_s7] ss:$0 sm:$0xff]  ;;  %v1662_v28 = vld [vmem:[%s2073_s12 + $0x18] sm:$0xff]  }
 0x3b6   :  { %v1695_v32 = vpop.eup %1694 }
 0x3dd   :  { %v460_v39 = vpop.f32.mrb[12].mxu0 }
 0x3de   :  { %v1531_v40 = vpop.f32.mrb[13].mxu0  ;;  %v467_v7 = vmul.f32 %v1685_v4, %v460_v39 }
 0x3df   :  { %v463_v12 = vpop.f32.mrb[14].mxu0 }
 0x3e0   :  { %v1532_v41 = vpop.f32.mrb[15].mxu0 }
 0x3e5   :  { %v570_v42 = vpop.f32.mrb[16].mxu0 }
 0x3e6   :  { %v1543_v43 = vpop.f32.mrb[17].mxu0  ;;  %v577_v19 = vmul.f32 %v1689_v16, %v570_v42  ;;  %v1425_v16 = vld [vmem:[%s2071_s8] ss:$0 sm:$0xff] }
 0x3e7   :  { %v573_v45 = vpop.f32.mrb[18].mxu0 }
 0x3e8   :  { %v1544_v47 = vpop.f32.mrb[19].mxu0 }
 0x3ed   :  { %v1985_v48 = vpop.f32.mrb[20].mxu0 }
 0x3ee   :  { %v1555_v49 = vpop.f32.mrb[21].mxu0  ;;  %v707_v36 = vmul.f32 %v1695_v32, %v1985_v48 }
 0x3ef   :  { %v703_v51 = vpop.f32.mrb[22].mxu0 }
 0x3f0   :  { %v1556_v53 = vpop.f32.mrb[23].mxu0 }
 0x3f5   :  { %v810_v56 = vpop.f32.mrb[24].mxu0 }
 0x3f6   :  { %v817_v58 = vmul.f32 %v1683_v55, %v810_v56  ;;  %v1567_v59 = vpop.f32.mrb[25].mxu0 }
 0x3f7   :  { %v813_v61 = vpop.f32.mrb[26].mxu0 }
 0x3f8   :  { %v1637_v63 = vpack.i.bf16 %v817_v58, %v357_v57  ;;  %v1568_v1 = vpop.f32.mrb[27].mxu0 }
 0x3fa   :  { %1638 = vrot.lane.b32.xlu1 %v1637_v63, %s1721_s22 }
 0x3fd   :  { %v920_v6 = vpop.f32.mrb[28].mxu0 }
 0x3fe   :  { %v927_v8 = vmul.f32 %v1687_v5, %v920_v6  ;;  %v1579_v9 = vpop.f32.mrb[29].mxu0  ;;  %v1657_v5 = vld [vmem:[%s2070_s10] sm:$0xff]   ;;  %v1658_v6 = vld [vmem:[%s2070_s10 + $0x8] sm:$0xff]  }
 0x3ff   :  { %v923_v13 = vpop.f32.mrb[30].mxu0  ;;  %1602 = vmatpush3.bf16.msra.mxu0 %v1657_v5 }
 0x400   :  { %v1642_v14 = vpack.i.bf16 %v927_v8, %v467_v7  ;;  %v1580_v15 = vpop.f32.mrb[31].mxu0  ;;  %1603 = vmatprep.subr.bf16.mxu0 %v1708_v0 }
 0x402   :  { %1643 = vrot.lane.b32.xlu0 %v1642_v14, %s1722_s25 }
 0x403   :  { %1604 = vmatpush3.bf16.msra.mxu0 %v1658_v6 }
 0x405   :  { %v1030_v18 = vpop.f32.mrb[32].mxu0 }
 0x406   :  { %v1037_v11 = vmul.f32 %v1691_v17, %v1030_v18  ;;  %v1591_v20 = vpop.f32.mrb[33].mxu0 }
 0x407   :  { %v1033_v21 = vpop.f32.mrb[34].mxu0  ;;  %v1426_v20 = vld [vmem:[%s2072_s9] ss:$0 sm:$0xff] }
 0x408   :  { %v1647_v22 = vpack.i.bf16 %v1037_v11, %v577_v19  ;;  %v1592_v23 = vpop.f32.mrb[35].mxu0 }
 0x40a   :  { %1648 = vrot.lane.b32.xlu1 %v1647_v22, %s1723_s26 }
 0x46c   :  { %v1639_v26 = vpop.permute.xlu1 %1638 }
 0x46d   :  { %v1641_v29 = vunpack.i.h.bf16 %v1639_v26  ;;  %v1640_v30 = vunpack.i.l.bf16 %v1639_v26  ;;  %v1660_v26 = vld [vmem:[%s2073_s12 + $0x8] sm:$0xff]  }
 0x46f   :  { %v1050_v38 = vsel %vm140_vm2, %v707_v36, %v1641_v29  ;;  %v590_v39 = vsel %vm140_vm2, %v247_v35, %v1640_v30  ;;  %v1427_v29 = vld [vmem:[%s2074_s11] ss:$0 sm:$0xff] }
 0x474   :  { %v1644_v27 = vpop.permute.xlu0 %1643 }
 0x475   :  { %v1646_v33 = vunpack.i.h.bf16 %v1644_v27  ;;  %v1645_v34 = vunpack.i.l.bf16 %v1644_v27  ;;  %v1661_v27 = vld [vmem:[%s2073_s12 + $0x10] sm:$0xff]  }
 0x477   :  { %v1051_v41 = vsel %vm591_vm4, %v1050_v38, %v1646_v33  ;;  %v592_v42 = vsel %vm591_vm4, %v590_v39, %v1645_v34 }
 0x47c   :  { %v1649_v37 = vpop.permute.xlu1 %1648 }
 0x47d   :  { %v1651_v40 = vunpack.i.h.bf16 %v1649_v37  ;;  %v1650_v12 = vunpack.i.l.bf16 %v1649_v37 }
 0x47f   :  { %v1052_v43 = vsel %vm593_vm5, %v1051_v41, %v1651_v40  ;;  %v594_v44 = vsel %vm593_vm5, %v592_v42, %v1650_v12 }
 0x480   :  { %v1053_v45 = vpack.c.bf16 %v1052_v43, %v594_v44 }
 0x482   :  { %1598 = vmatmul.mubr.msk.bf16.vlgmr.msra.gmra.mrb[32].mxu1 %vm86_vm1, %v1053_v45 }
 0x483   :  { %1617 = vmatprep.mubr.msk.bf16.mxu1 %vm1709_vm0, %v1708_v0  ;;  %1610 = vmatpush3.bf16.msra.mxu1 %v1659_v25 }
 0x484   :  { %1611 = vmatprep.subr.bf16.mxu1 %v1708_v0 }
 0x487   :  { %1612 = vmatpush3.bf16.msra.mxu1 %v1660_v26 }
 0x488   :  { %1613 = vmatprep.subr.bf16.mxu1 %v1708_v0 }
 0x48b   :  { %1614 = vmatpush3.bf16.msra.mxu1 %v1661_v27 }
 0x48c   :  { %1615 = vmatprep.subr.bf16.mxu1 %v1708_v0 }
 0x48f   :  { %1616 = vmatpush3.bf16.msra.mxu1 %v1662_v28 }
 0x555   :  { %v1114_v47 = vpop.f32.mrb[32].mxu1 }
 0x556   :  { %v1115_v48 = vadd.f32 %v1421_v31, %v1114_v47  ;;  %v1599_v49 = vpop.f32.mrb[33].mxu1 }
 0x557   :  { %v1117_v51 = vpop.f32.mrb[34].mxu1 }
 0x558   :  { %v1118_v52 = vadd.f32 %v1421_v31, %v1117_v51  ;;  %v1600_v53 = vpop.f32.mrb[35].mxu1  ;;  %v1121_v54 = vadd.f32 %v1115_v48, %v56_v46 }
 0x559   :  { %v1431_v53 = vld [vmem:[%s2075_s13] ss:$0 sm:$0xff] }
 0x55a   :  { %v1123_v55 = vsel %vm86_vm1, %v1121_v54, 0.0  ;;  %v1122_v56 = vadd.f32 %v1118_v52, %v57_v50 }
 0x55b   :  { %1124 = vadd.xlane.f32.xlu1 %v1123_v55 }
 0x55c   :  { %v1126_v57 = vsel %vm86_vm1, %v1122_v56, 0.0 }
 0x55d   :  { %1127 = vadd.xlane.f32.xlu0 %v1126_v57 }
 0x5e8   :  { %v1125_v58 = vpop.xlane.xlu1 %1124 }
 0x5e9   :  { %v1130_v59 = vmul.f32 0.03125, %v1125_v58 }
 0x5ea   :  { %v1128_v60 = vpop.xlane.xlu0 %1127 }
 0x5eb   :  { %v1132_v61 = vsub.f32 %v1121_v54, %v1130_v59  ;;  %v1131_v62 = vmul.f32 0.03125, %v1128_v60 }
 0x5ed   :  { %v1133_v63 = vsub.f32 %v1122_v56, %v1131_v62  ;;  %v1134_v1 = vmul.f32 %v1132_v61, %v1132_v61 }
 0x5ef   :  { %v1136_v3 = vsel %vm86_vm1, %v1134_v1, 0.0  ;;  %v1135_v2 = vmul.f32 %v1133_v63, %v1133_v63 }
 0x5f0   :  { %1137 = vadd.xlane.f32.xlu0 %v1136_v3 }
 0x5f1   :  { %v1139_v4 = vsel %vm86_vm1, %v1135_v2, 0.0 }
 0x5f2   :  { %1140 = vadd.xlane.f32.xlu1 %v1139_v4 }
 0x67d   :  { %v1138_v7 = vpop.xlane.xlu0 %1137 }
 0x67e   :  { %v1142_v8 = vmul.f32 0.03125, %v1138_v7 }
 0x67f   :  { %v1141_v9 = vpop.xlane.xlu1 %1140 }
 0x680   :  { %v1144_v10 = vadd.f32 1e-12, %v1142_v8  ;;  %v1143_v13 = vmul.f32 0.03125, %v1141_v9 }
 0x682   :  { %1696 = vrsqrt.f32 %v1144_v10  ;;  %v1145_v14 = vadd.f32 1e-12, %v1143_v13 }
 0x684   :  { %1698 = vrsqrt.f32 %v1145_v14 }
 0x68c   :  { %v1697_v15 = vpop.eup %1696 }
 0x68d   :  { %v1148_v17 = vmul.f32 %v1697_v15, %v1132_v61 }
 0x68e   :  { %v1699_v18 = vpop.eup %1698 }
 0x68f   :  { %v1157_v19 = vmul.f32 %v1425_v16, %v1148_v17  ;;  %v1149_v11 = vmul.f32 %v1699_v18, %v1133_v63 }
 0x691   :  { %v1158_v21 = vmul.f32 %v1425_v16, %v1149_v11  ;;  %v1166_v22 = vadd.f32 %v1426_v20, %v1157_v19  ;;  %v1437_v11 = vld [vmem:[%s2076_s14] ss:$0 sm:$0xff] }
 0x693   :  { %v1167_v23 = vadd.f32 %v1426_v20, %v1158_v21 }
 0x695   :  { %v1168_v24 = vpack.c.bf16 %v1167_v23, %v1166_v22 }
 0x697   :  { %1606 = vmatmul.mubr.msk.bf16.vlgmr.msra.gmra.mrb[36].mxu0 %vm86_vm1, %v1168_v24 }
 0x76a   :  { %v1229_v30 = vpop.f32.mrb[36].mxu0 }
 0x76b   :  { %v1230_v32 = vadd.f32 %v1427_v29, %v1229_v30  ;;  %v1607_v33 = vpop.f32.mrb[37].mxu0 }
 0x76c   :  { %v1232_v34 = vpop.f32.mrb[38].mxu0 }
 0x76d   :  { %v1238_v35 = vmul.f32 0.044715, %v1230_v32  ;;  %v1233_v36 = vadd.f32 %v1427_v29, %v1232_v34  ;;  %v1608_v37 = vpop.f32.mrb[39].mxu0  ;;  %v1236_v47 = vmul.f32 0.5, %v1230_v32 }
 0x76f   :  { %v1240_v38 = vmul.f32 %v1238_v35, %v1230_v32  ;;  %v1239_v39 = vmul.f32 0.044715, %v1233_v36  ;;  %v1237_v48 = vmul.f32 0.5, %v1233_v36 }
 0x771   :  { %v1242_v40 = vmul.f32 %v1240_v38, %v1230_v32  ;;  %v1241_v12 = vmul.f32 %v1239_v39, %v1233_v36 }
 0x773   :  { %v1244_v41 = vadd.f32 %v1242_v40, %v1230_v32  ;;  %v1243_v42 = vmul.f32 %v1241_v12, %v1233_v36 }
 0x775   :  { %v1246_v43 = vmul.f32 0.7978846, %v1244_v41  ;;  %v1245_v0 = vadd.f32 %v1243_v42, %v1233_v36 }
 0x777   :  { %1700 = vtanh.f32 %v1246_v43  ;;  %v1247_v44 = vmul.f32 0.7978846, %v1245_v0 }
 0x779   :  { %1702 = vtanh.f32 %v1247_v44 }
 0x781   :  { %v1701_v45 = vpop.eup %1700 }
 0x782   :  { %v1250_v31 = vadd.f32 1.0, %v1701_v45 }
 0x783   :  { %v1703_v46 = vpop.eup %1702 }
 0x784   :  { %v1251_v49 = vadd.f32 1.0, %v1703_v46  ;;  %v1252_v50 = vmul.f32 %v1250_v31, %v1236_v47 }
 0x786   :  { %v1253_v51 = vmul.f32 %v1251_v49, %v1237_v48 }
 0x788   :  { %v1254_v52 = vpack.c.bf16 %v1253_v51, %v1252_v50 }
 0x78a   :  { %1618 = vmatmul.mubr.msk.bf16.vlgmr.msra.gmra.mrb[36].mxu1 %vm1294_vm6, %v1254_v52 }
 0x85d   :  { %v1332_v54 = vpop.f32.mrb[36].mxu1 }
 0x85e   :  { %v1333_v55 = vadd.f32 %v1431_v53, %v1332_v54  ;;  %v1619_v56 = vpop.f32.mrb[37].mxu1 }
 0x85f   :  { %v1335_v57 = vpop.f32.mrb[38].mxu1 }
 0x860   :  { %v1336_v58 = vadd.f32 %v1431_v53, %v1335_v57  ;;  %v1620_v59 = vpop.f32.mrb[39].mxu1  ;;  %v1339_v60 = vadd.f32 %v1333_v55, %v1166_v22  ;;  %v1438_v22 = vld [vmem:[%s2077_s15] ss:$0 sm:$0xff] }
 0x862   :  { %v1341_v61 = vsel %vm86_vm1, %v1339_v60, 0.0  ;;  %v1340_v62 = vadd.f32 %v1336_v58, %v1167_v23 }
 0x863   :  { %1342 = vadd.xlane.f32.xlu0 %v1341_v61 }
 0x864   :  { %v1344_v63 = vsel %vm86_vm1, %v1340_v62, 0.0 }
 0x865   :  { %1345 = vadd.xlane.f32.xlu1 %v1344_v63 }
 0x8f0   :  { %v1343_v1 = vpop.xlane.xlu0 %1342 }
 0x8f1   :  { %v1347_v3 = vmul.f32 0.03125, %v1343_v1 }
 0x8f2   :  { %v1346_v2 = vpop.xlane.xlu1 %1345 }
 0x8f3   :  { %v1349_v4 = vsub.f32 %v1339_v60, %v1347_v3  ;;  %v1348_v5 = vmul.f32 0.03125, %v1346_v2 }
 0x8f5   :  { %v1350_v6 = vsub.f32 %v1340_v62, %v1348_v5  ;;  %v1351_v7 = vmul.f32 %v1349_v4, %v1349_v4 }
 0x8f7   :  { %v1353_v8 = vsel %vm86_vm1, %v1351_v7, 0.0  ;;  %v1352_v9 = vmul.f32 %v1350_v6, %v1350_v6 }
 0x8f8   :  { %1354 = vadd.xlane.f32.xlu0 %v1353_v8 }
 0x8f9   :  { %v1356_v10 = vsel %vm86_vm1, %v1352_v9, 0.0 }
 0x8fa   :  { %1357 = vadd.xlane.f32.xlu1 %v1356_v10 }
 0x985   :  { %v1355_v13 = vpop.xlane.xlu0 %1354 }
 0x986   :  { %v1359_v14 = vmul.f32 0.03125, %v1355_v13 }
 0x987   :  { %v1358_v15 = vpop.xlane.xlu1 %1357 }
 0x988   :  { %v1361_v16 = vadd.f32 1e-12, %v1359_v14  ;;  %v1360_v17 = vmul.f32 0.03125, %v1358_v15 }
 0x98a   :  { %1704 = vrsqrt.f32 %v1361_v16  ;;  %v1362_v18 = vadd.f32 1e-12, %v1360_v17 }
 0x98c   :  { %1706 = vrsqrt.f32 %v1362_v18 }
 0x994   :  { %v1705_v19 = vpop.eup %1704 }
 0x995   :  { %v1365_v20 = vmul.f32 %v1705_v19, %v1349_v4 }
 0x996   :  { %v1707_v21 = vpop.eup %1706 }
 0x997   :  { %v1374_v23 = vmul.f32 %v1437_v11, %v1365_v20  ;;  %v1366_v24 = vmul.f32 %v1707_v21, %v1350_v6 }
 0x999   :  { %v1383_v25 = vadd.f32 %v1438_v22, %v1374_v23  ;;  %v1375_v26 = vmul.f32 %v1437_v11, %v1366_v24 }
 0x99b   :  { %v1441_v27 = vpack.c.bf16 %v1383_v25, %v1383_v25  ;;  %v1384_v28 = vadd.f32 %v1438_v22, %v1375_v26 }
 0x99d   :  { %1394 = vst.msk [vmem:[%s2078_s16] sm:$0xf] %vm1393_vm7, %v1441_v27  ;;  %v1442_v29 = vpack.c.bf16 %v1384_v28, %v1384_v28 }
 0x99f   :  { %1395 = vst.msk [vmem:[%s2078_s16 + $0x4] sm:$0xf] %vm1393_vm7, %v1442_v29 }

</bundles_post_ra>
